<compile_context>
chip_gen: v7x
topology: tpu7x:2x2x1
jax: 0.10.0
libtpu: 0.0.40
codegen_flags: <defaults>
</compile_context>

<pallas_src>
import math

import jax
import jax.numpy as jnp
from jax.experimental import pallas as pl
from jax.experimental.pallas import tpu as pltpu


OUT_PAD = 128  # lane-dense width for the final projection / output (out_dim=2 -> 128)


def _layer1_kernel(a_ref, xk_ref, xi_ref, w1_rel_ref, w1_root_ref, b1_ref,
                   h1_ref, acc_ref):
    """Grid (i, k): i = node-row tile ("parallel"), k = neighbor-col tile (reduction).

    acc <- sum_k A[i,k] @ x[k]                      (sum aggregation, bf16 MXU, f32 acc)
    last k: h1[i] = relu(acc @ W1_rel + x[i] @ W1_root + b1)
    """
    k = pl.program_id(1)

    @pl.when(k == 0)
    def _():
        acc_ref[...] = jnp.zeros_like(acc_ref)

    # bf16 A tile fed straight to the MXU; narrow x block cast to bf16 (cheap).
    acc_ref[...] += jnp.dot(a_ref[...], xk_ref[...].astype(jnp.bfloat16),
                            preferred_element_type=jnp.float32)

    @pl.when(k == pl.num_programs(1) - 1)
    def _():
        h1 = (jnp.dot(acc_ref[...], w1_rel_ref[...],
                      preferred_element_type=jnp.float32)
              + jnp.dot(xi_ref[...], w1_root_ref[...],
                        preferred_element_type=jnp.float32)
              + b1_ref[...])
        h1_ref[...] = jnp.maximum(h1, 0.0)  # .relu()


def _layer2_kernel(a_ref, h1k_ref, h1i_ref, w2_rel_ref, w2_root_ref, b2_ref,
                   o_ref, acc_ref):
    """acc <- sum_k A[i,k] @ h1[k]   (width = hidden, aggregation first)
    last k: out[i] = acc @ W2_rel + h1[i] @ W2_root + b2   (lane-dense projection)."""
    k = pl.program_id(1)

    @pl.when(k == 0)
    def _():
        acc_ref[...] = jnp.zeros_like(acc_ref)

    acc_ref[...] += jnp.dot(a_ref[...], h1k_ref[...].astype(jnp.bfloat16),
                            preferred_element_type=jnp.float32)

    @pl.when(k == pl.num_programs(1) - 1)
    def _():
        o_ref[...] = (jnp.dot(acc_ref[...], w2_rel_ref[...],
                              preferred_element_type=jnp.float32)
                      + jnp.dot(h1i_ref[...], w2_root_ref[...],
                                preferred_element_type=jnp.float32)
                      + b2_ref[...]).astype(o_ref.dtype)


def graphconv2_forward(x, edge_index, params, *, tile_m=512, tile_k=1024):
    """x: (N, F_in) float32, edge_index: (2, E) int32. Returns (N, out_dim) float32."""
    n, f_in = x.shape
    w1_rel, w1_root, b1, w2_rel, w2_root, b2 = params
    hidden = w1_rel.shape[1]
    out_dim = w2_rel.shape[1]

    # Clamp tiles for small graphs; keep 128-aligned (lane / (8,128) constraints).
    n128 = pl.cdiv(n, 128) * 128
    tile_m = min(tile_m, n128)
    tile_k = min(tile_k, n128)
    assert tile_m % 128 == 0 and tile_k % 128 == 0
    lcm = tile_m * tile_k // math.gcd(tile_m, tile_k)
    n_pad = pl.cdiv(n, lcm) * lcm
    gm, gk = n_pad // tile_m, n_pad // tile_k

    # Dense adjacency A[dst, src] = #edges(src->dst), built directly in bf16.
    # Integer edge multiplicities <= 256 are exact in bf16.
    src, dst = edge_index[0], edge_index[1]
    adj = jnp.zeros((n_pad, n_pad), jnp.bfloat16).at[dst, src].add(
        jnp.ones(dst.shape, jnp.bfloat16))

    # Padded rows of x are zero; A's padded columns are zero, so padded-row h1
    # (= relu(b1)) never contaminates real rows; output is sliced back to [:n].
    x_pad = jnp.zeros((n_pad, f_in), jnp.float32).at[:n].set(x)

    # Lane-dense layer-2 weights / bias (applied once per row tile in the epilogue;
    # nothing padded is streamed per k-step).
    w2_rel_p = jnp.zeros((hidden, OUT_PAD), jnp.float32).at[:, :out_dim].set(w2_rel)
    w2_root_p = jnp.zeros((hidden, OUT_PAD), jnp.float32).at[:, :out_dim].set(w2_root)
    b2_p = jnp.zeros((1, OUT_PAD), jnp.float32).at[0, :out_dim].set(b2)
    b1_2d = b1.reshape(1, hidden)

    grid = (gm, gk)
    # 32 MiB scoped VMEM is safe on v5e/v6e/v7x; default tiles use < 4 MiB. On v6e,
    # raise this (it has 128 MiB physical) before pushing tile_k past ~2048 — but do
    # not copy that value to v7x (64 MiB physical).
    cparams = pltpu.CompilerParams(
        dimension_semantics=("parallel", "arbitrary"),
        vmem_limit_bytes=32 * 1024 * 1024,
    )

    def pinned(shape):
        return pl.BlockSpec(shape, lambda i, k: (0, 0))

    # ---- kernel 1: neighbor aggregation + GraphConv layer 1 -------------------
    h1 = pl.pallas_call(
        _layer1_kernel,
        out_shape=jax.ShapeDtypeStruct((n_pad, hidden), jnp.float32),
        grid=grid,
        in_specs=[
            pl.BlockSpec((tile_m, tile_k), lambda i, k: (i, k)),  # A tile (streams)
            pl.BlockSpec((tile_k, f_in), lambda i, k: (k, 0)),    # x[k] neighbor rows
            pl.BlockSpec((tile_m, f_in), lambda i, k: (i, 0)),    # x[i] root rows
            pinned((f_in, hidden)),                               # W1_rel   (resident)
            pinned((f_in, hidden)),                               # W1_root  (resident)
            pinned((1, hidden)),                                  # b1       (resident)
        ],
        out_specs=pl.BlockSpec((tile_m, hidden), lambda i, k: (i, 0)),
        scratch_shapes=[pltpu.VMEM((tile_m, f_in), jnp.float32)],
        compiler_params=cparams,
    )(adj, x_pad, x_pad, w1_rel, w1_root, b1_2d)

    # ---- kernel 2: neighbor aggregation of h1 + GraphConv layer 2 -------------
    # NOTE: if kernel 2's A DMA is still exposed after tile enlargement (tiny per-step
    # compute), add pipeline_mode=pl.Buffered(3) on the A BlockSpec below.
    out_pad = pl.pallas_call(
        _layer2_kernel,
        out_shape=jax.ShapeDtypeStruct((n_pad, OUT_PAD), jnp.float32),
        grid=grid,
        in_specs=[
            pl.BlockSpec((tile_m, tile_k), lambda i, k: (i, k)),  # A tile (streams)
            pl.BlockSpec((tile_k, hidden), lambda i, k: (k, 0)),  # h1[k] (width 16)
            pl.BlockSpec((tile_m, hidden), lambda i, k: (i, 0)),  # h1[i] root rows
            pinned((hidden, OUT_PAD)),                            # W2_rel  (resident)
            pinned((hidden, OUT_PAD)),                            # W2_root (resident)
            pinned((1, OUT_PAD)),                                 # b2      (resident)
        ],
        out_specs=pl.BlockSpec((tile_m, OUT_PAD), lambda i, k: (i, 0)),
        scratch_shapes=[pltpu.VMEM((tile_m, hidden), jnp.float32)],
        compiler_params=cparams,
    )(adj, h1, h1, w2_rel_p, w2_root_p, b2_p)

    return out_pad[:n, :out_dim]


def init_params(key, in_dim, hidden_dim, out_dim):
    """GraphConv(-1 -> hidden) ; GraphConv(hidden -> out).
    Each GraphConv has lin_rel (with bias) and lin_root (no bias).
    Weights stored transposed: (in, out) so kernels do x @ W."""
    k1, k2, k3, k4, k5 = jax.random.split(key, 5)
    s1 = 1.0 / jnp.sqrt(jnp.float32(in_dim))
    s2 = 1.0 / jnp.sqrt(jnp.float32(hidden_dim))
    w1_rel = jax.random.uniform(k1, (in_dim, hidden_dim), jnp.float32, -s1, s1)
    w1_root = jax.random.uniform(k2, (in_dim, hidden_dim), jnp.float32, -s1, s1)
    b1 = jax.random.uniform(k3, (hidden_dim,), jnp.float32, -s1, s1)
    w2_rel = jax.random.uniform(k4, (hidden_dim, out_dim), jnp.float32, -s2, s2)
    w2_root = jax.random.uniform(k5, (hidden_dim, out_dim), jnp.float32, -s2, s2)
    b2 = jnp.zeros((out_dim,), jnp.float32)
    return (w1_rel, w1_root, b1, w2_rel, w2_root, b2)


def reference_forward(x, edge_index, params):
    """Plain-JAX f32 reference (un-reassociated, un-tiled)."""
    n = x.shape[0]
    adj = jnp.zeros((n, n), jnp.float32).at[edge_index[1], edge_index[0]].add(1.0)
    (w1_rel, w1_root, b1, w2_rel, w2_root, b2) = params
    h1 = jnp.maximum((adj @ x) @ w1_rel + x @ w1_root + b1, 0.0)
    return (adj @ h1) @ w2_rel + h1 @ w2_root + b2


if __name__ == "__main__":
    key = jax.random.PRNGKey(0)
    k_x, k_e, k_p = jax.random.split(key, 3)

    N = 700       # nodes (pads to 768 -> 3x3 grid of 256-tiles in this small test)
    F_IN = 8      # input features (GraphConv(-1, 16) lazily resolved to 8)
    HIDDEN = 16
    OUT = 2
    E = 2048      # edges

    x = jax.random.normal(k_x, (N, F_IN), jnp.float32)
    # Deterministic edge list: a ring plus random extra edges.
    ring_src = jnp.arange(N, dtype=jnp.int32)
    ring_dst = (ring_src + 1) % N
    extra = jax.random.randint(k_e, (2, E - N), 0, N, jnp.int32)
    edge_index = jnp.concatenate(
        [jnp.stack([ring_src, ring_dst]), extra], axis=1).astype(jnp.int32)

    params = init_params(k_p, F_IN, HIDDEN, OUT)

    # Small tiles for the small test graph; production defaults are (512, 1024).
    out = graphconv2_forward(x, edge_index, params, tile_m=256, tile_k=256)
    out = jax.block_until_ready(out)

    ref = reference_forward(x, edge_index, params)
    assert out.shape == (N, OUT)
    # bf16 MXU feed of x / h1 gives ~1e-3 relative error vs the f32 reference.
    max_err = float(jnp.max(jnp.abs(out - ref)))
    assert jnp.allclose(out, ref, atol=5e-2, rtol=5e-2), (
        f"mismatch vs reference (max abs err {max_err})")

    print("KERNEL_OK")
</pallas_src>

<mosaic_0001>
module attributes {stable_mosaic.version = 11 : i64} {
  func.func @_layer1_kernel(%arg0: i32, %arg1: i32, %arg2: memref<256x256xbf16, #tpu.memory_space<vmem>>, %arg3: memref<256x8xf32, #tpu.memory_space<vmem>>, %arg4: memref<256x8xf32, #tpu.memory_space<vmem>>, %arg5: memref<8x16xf32, #tpu.memory_space<vmem>>, %arg6: memref<8x16xf32, #tpu.memory_space<vmem>>, %arg7: memref<1x16xf32, #tpu.memory_space<vmem>>, %arg8: memref<256x16xf32, #tpu.memory_space<vmem>>, %arg9: memref<256x8xf32, #tpu.memory_space<vmem>>) attributes {dimension_semantics = [#tpu.dimension_semantics<parallel>, #tpu.dimension_semantics<arbitrary>], iteration_bounds = array<i64: 3, 3>, scalar_prefetch = 0 : i64, scratch_operands = 1 : i64, tpu.core_type = #tpu.core_type<tc>, window_params = [{transform_indices = @transform_0, window_bounds = array<i64: 256, 256>}, {transform_indices = @transform_1, window_bounds = array<i64: 256, 8>}, {transform_indices = @transform_2, window_bounds = array<i64: 256, 8>}, {pipeline_mode = #tpu.pipeline_mode<synchronous>, transform_indices = @transform_3, window_bounds = array<i64: 8, 16>}, {pipeline_mode = #tpu.pipeline_mode<synchronous>, transform_indices = @transform_4, window_bounds = array<i64: 8, 16>}, {pipeline_mode = #tpu.pipeline_mode<synchronous>, transform_indices = @transform_5, window_bounds = array<i64: 1, 16>}, {transform_indices = @transform_6, window_bounds = array<i64: 256, 16>}]} {
    %c0_i32 = arith.constant 0 : i32
    %0 = arith.cmpi eq, %arg1, %c0_i32 : i32
    %1 = arith.extui %0 : i1 to i32
    %c0_i32_0 = arith.constant 0 : i32
    %2 = arith.cmpi ne, %1, %c0_i32_0 : i32
    scf.if %2 {
      %cst_9 = arith.constant 0.000000e+00 : f32
      %13 = vector.broadcast %cst_9 : f32 to vector<256x8xf32>
      %c0_10 = arith.constant 0 : index
      %c0_11 = arith.constant 0 : index
      %14 = vector.load %arg9[%c0_10, %c0_11] : memref<256x8xf32, #tpu.memory_space<vmem>>, vector<256x8xf32>
      tpu.vector_store %arg9[%c0_10, %c0_11], %13 {strides = array<i32>} : memref<256x8xf32, #tpu.memory_space<vmem>>, vector<256x8xf32>,
    } else {
    }
    %c0 = arith.constant 0 : index
    %c0_1 = arith.constant 0 : index
    %3 = vector.load %arg9[%c0, %c0_1] : memref<256x8xf32, #tpu.memory_space<vmem>>, vector<256x8xf32>
    %c0_2 = arith.constant 0 : index
    %c0_3 = arith.constant 0 : index
    %4 = vector.load %arg2[%c0_2, %c0_3] : memref<256x256xbf16, #tpu.memory_space<vmem>>, vector<256x256xbf16>
    %c0_4 = arith.constant 0 : index
    %c0_5 = arith.constant 0 : index
    %5 = vector.load %arg3[%c0_4, %c0_5] : memref<256x8xf32, #tpu.memory_space<vmem>>, vector<256x8xf32>
    %6 = arith.truncf %5 : vector<256x8xf32> to vector<256x8xbf16>
    %cst = arith.constant dense<0.000000e+00> : vector<256x8xf32>
    %7 = tpu.matmul %4, %6, %cst {dimension_numbers = #tpu.dot_dimension_numbers<[1], [0], [0], [1], [0, 0, 1, 1], [], []>} : vector<256x256xbf16>, vector<256x8xbf16>, vector<256x8xf32> -> vector<256x8xf32>
    %8 = arith.addf %3, %7 : vector<256x8xf32>
    %c0_6 = arith.constant 0 : index
    %c0_7 = arith.constant 0 : index
    %9 = vector.load %arg9[%c0_6, %c0_7] : memref<256x8xf32, #tpu.memory_space<vmem>>, vector<256x8xf32>
    tpu.vector_store %arg9[%c0_6, %c0_7], %8 {strides = array<i32>} : memref<256x8xf32, #tpu.memory_space<vmem>>, vector<256x8xf32>,
    %c2_i32 = arith.constant 2 : i32
    %10 = arith.cmpi eq, %arg1, %c2_i32 : i32
    %11 = arith.extui %10 : i1 to i32
    %c0_i32_8 = arith.constant 0 : i32
    %12 = arith.cmpi ne, %11, %c0_i32_8 : i32
    scf.if %12 {
      %c0_9 = arith.constant 0 : index
      %c0_10 = arith.constant 0 : index
      %13 = vector.load %arg9[%c0_9, %c0_10] : memref<256x8xf32, #tpu.memory_space<vmem>>, vector<256x8xf32>
      %c0_11 = arith.constant 0 : index
      %c0_12 = arith.constant 0 : index
      %14 = vector.load %arg5[%c0_11, %c0_12] : memref<8x16xf32, #tpu.memory_space<vmem>>, vector<8x16xf32>
      %cst_13 = arith.constant dense<0.000000e+00> : vector<256x16xf32>
      %15 = tpu.matmul %13, %14, %cst_13 {dimension_numbers = #tpu.dot_dimension_numbers<[1], [0], [0], [1], [0, 0, 1, 1], [], []>} : vector<256x8xf32>, vector<8x16xf32>, vector<256x16xf32> -> vector<256x16xf32>
      %c0_14 = arith.constant 0 : index
      %c0_15 = arith.constant 0 : index
      %16 = vector.load %arg4[%c0_14, %c0_15] : memref<256x8xf32, #tpu.memory_space<vmem>>, vector<256x8xf32>
      %c0_16 = arith.constant 0 : index
      %c0_17 = arith.constant 0 : index
      %17 = vector.load %arg6[%c0_16, %c0_17] : memref<8x16xf32, #tpu.memory_space<vmem>>, vector<8x16xf32>
      %cst_18 = arith.constant dense<0.000000e+00> : vector<256x16xf32>
      %18 = tpu.matmul %16, %17, %cst_18 {dimension_numbers = #tpu.dot_dimension_numbers<[1], [0], [0], [1], [0, 0, 1, 1], [], []>} : vector<256x8xf32>, vector<8x16xf32>, vector<256x16xf32> -> vector<256x16xf32>
      %19 = arith.addf %15, %18 : vector<256x16xf32>
      %c0_19 = arith.constant 0 : index
      %c0_20 = arith.constant 0 : index
      %20 = vector.load %arg7[%c0_19, %c0_20] : memref<1x16xf32, #tpu.memory_space<vmem>>, vector<1x16xf32>
      %21 = vector.broadcast %20 : vector<1x16xf32> to vector<256x16xf32>
      %22 = arith.addf %19, %21 : vector<256x16xf32>
      %cst_21 = arith.constant 0.000000e+00 : f32
      %23 = vector.broadcast %cst_21 : f32 to vector<256x16xf32>
      %24 = arith.maximumf %22, %23 : vector<256x16xf32>
      %c0_22 = arith.constant 0 : index
      %c0_23 = arith.constant 0 : index
      %25 = vector.load %arg8[%c0_22, %c0_23] : memref<256x16xf32, #tpu.memory_space<vmem>>, vector<256x16xf32>
      tpu.vector_store %arg8[%c0_22, %c0_23], %24 {strides = array<i32>} : memref<256x16xf32, #tpu.memory_space<vmem>>, vector<256x16xf32>,
    } else {
    }
    return
  }
  func.func @transform_0(%arg0: i32, %arg1: i32) -> (i32, i32) {
    %c0_i32 = arith.constant 0 : i32
    return %arg0, %arg1 : i32, i32
  }
  func.func @transform_1(%arg0: i32, %arg1: i32) -> (i32, i32) {
    %c0_i32 = arith.constant 0 : i32
    %c0_i32_0 = arith.constant 0 : i32
    return %arg1, %c0_i32 : i32, i32
  }
  func.func @transform_2(%arg0: i32, %arg1: i32) -> (i32, i32) {
    %c0_i32 = arith.constant 0 : i32
    %c0_i32_0 = arith.constant 0 : i32
    return %arg0, %c0_i32 : i32, i32
  }
  func.func @transform_3(%arg0: i32, %arg1: i32) -> (i32, i32) {
    %c0_i32 = arith.constant 0 : i32
    %c0_i32_0 = arith.constant 0 : i32
    %c0_i32_1 = arith.constant 0 : i32
    return %c0_i32, %c0_i32_0 : i32, i32
  }
  func.func @transform_4(%arg0: i32, %arg1: i32) -> (i32, i32) {
    %c0_i32 = arith.constant 0 : i32
    %c0_i32_0 = arith.constant 0 : i32
    %c0_i32_1 = arith.constant 0 : i32
    return %c0_i32, %c0_i32_0 : i32, i32
  }
  func.func @transform_5(%arg0: i32, %arg1: i32) -> (i32, i32) {
    %c0_i32 = arith.constant 0 : i32
    %c0_i32_0 = arith.constant 0 : i32
    %c0_i32_1 = arith.constant 0 : i32
    return %c0_i32, %c0_i32_0 : i32, i32
  }
  func.func @transform_6(%arg0: i32, %arg1: i32) -> (i32, i32) {
    %c0_i32 = arith.constant 0 : i32
    %c0_i32_0 = arith.constant 0 : i32
    return %arg0, %c0_i32 : i32, i32
  }
}

</mosaic_0001>

<bundles_post_ra>
// kernel: tpu_custom_call.1
= control target key start
LH: loop header
LB: loop body
LE: loop exit
PB: predicated region body
PF: predicated region fallthrough
CT: control target
= control target key end

     0   :  { %s3276_s0 = inlined_call_operand.hbm [shape: bf16[768,768], index: 0, kind: input, shape index: {}]   ;;  %s3277_s1 = inlined_call_operand.vmem [shape: f32[768,8], index: 1, kind: input, shape index: {}]   ;;  %s3278_s2 = inlined_call_operand.vmem [shape: f32[768,8], index: 2, kind: input, shape index: {}]   ;;  %s3279_s3 = inlined_call_operand.hbm [shape: f32[8,16], index: 3, kind: input, shape index: {}]   ;;  %s3280_s4 = inlined_call_operand.hbm [shape: f32[8,16], index: 4, kind: input, shape index: {}]   ;;  %s3281_s5 = inlined_call_operand.hbm [shape: f32[1,16], index: 5, kind: input, shape index: {}]   ;;  %s3282_s6 = inlined_call_operand.vmem [shape: f32[768,16], index: 6, kind: output, shape index: {}]  }
   0x1   :  { %3289 = sst [smem:[#allocation14_spill]] %s3279_s3 }
   0x2   :  { %3290 = sst [smem:[#allocation15_spill]] %s3280_s4 }
   0x3   :  { %3291 = sst [smem:[#allocation16_spill]] %s3281_s5 }
   0x4   :  { %11 = vsyncpa [#allocation4], 0 }
   0x5   :  { %13 = vsyncpa [#allocation4 + $0x1], 0 }
   0x6   :  { %14 = vsyncpa [#allocation6], 0 }
   0x7   :  { %15 = vsyncpa [#allocation9], 0  ;;  %s2699_s21 = smov 0   ;;  %s2701_s22 = smov 0  }
   0x8   :  { %s2703_s23 = smov 0   ;;  %s2705_s24 = smov 0  }
   0x9   :  { %s2707_s25 = smov 0   ;;  %s2709_s26 = smov 0  }
   0xa   :  { %s2711_s27 = smov 0   ;;  %s2713_s28 = smov 0  }
   0xb LB: > { %3292 = sst [smem:[#allocation13_spill]] %s2654_s28  ;;  %s1861_s29 = sadd.s32 4294967295, %s2654_s28   ;;  %s2654_s28 = sphi %s2713_s28, %s3315_s28   ;;  %s2650_s27 = sphi %s2711_s27, %s3314_s27   ;;  %s2646_s26 = sphi %s2709_s26, %s3313_s26   ;;  %s2642_s25 = sphi %s2707_s25, %s3312_s25   ;;  %s2638_s24 = sphi %s2705_s24, %s3311_s24   ;;  %s2634_s23 = sphi %s2703_s23, %s3310_s23   ;;  %s2630_s22 = sphi %s2701_s22, %s3309_s22   ;;  %s2626_s21 = sphi %s2699_s21, %s3308_s21  }
   0xc   : > { %p49_p0 = scmp.ne.s32.totalorder %s2634_s23, %s2630_s22  ;;  %p50_p1 = scmp.eq.s32.totalorder %s2654_s28, 0 }
   0xd   : > { %p55_p2 = scmp.ne.s32.totalorder %s2630_s22, %s2626_s21  ;;  %p2743_p3 = scmp.eq.s32.totalorder %s1861_s29, 0 }
   0xe   : > { %p51_p4 = por %p50_p1, %p49_p0  ;;  %p1863_p5 = scmp.ge.s32.totalorder %s2654_s28, 1 }
   0xf   : > { %s3293_s7 = scalar_select %p2743_p3, 1, 0 }
  0x10   : > { %p2750_p6 = por %p2743_p3, %p55_p2  ;;  %p207_p7 = scmp.lt.s32.totalorder %s2654_s28, 10 }
  0x11   : > { %s2656_s10 = smov [#allocation5]   ;;  %p2343_p10 = scmp.lt.s32.totalorder %s2654_s28, 9 }
  0x12   : > { %s3294_s8 = scalar_select %p2750_p6, 1, 0 }
  0x13   : > { %p2755_p8 = pnand %p1863_p5, %p207_p7  ;;  %s220_s11 = sshll.u32 %s2656_s10, 4  ;;  %s221_s11 = int_to_ptr.vmem [resolvable:$true] %s220_s11 }
  0x14   : > { %p2768_p12 = pnand %p2343_p10, %p51_p4  ;;  %s2657_s14 = smov [#allocation7]  }
  0x15   : > { %s3295_s9 = scalar_select %p2755_p8, 1, 0 }
  0x16   : > { %p2326_p9 = pneg %p2755_p8  ;;  %s231_s15 = sshll.u32 %s2657_s14, 4  ;;  %s232_s15 = int_to_ptr.vmem [resolvable:$true] %s231_s15 }
  0x17   : > { %s3297_s13 = scalar_select %p2768_p12, 1, 0 }
  0x18   : > { %p2764_p11 = pnand %p2326_p9, %p2743_p3  ;;  %s2658_s16 = smov [#allocation8]  }
  0x19   : > { %s242_s17 = sshll.u32 %s2658_s16, 4  ;;  %s3298_s3 = sld [smem:[#allocation14_spill]]  ;;  %s2796_s17 = int_to_ptr.vmem [resolvable:$true] %s242_s17 }
  0x1a   : > { %p2780_p0 = pneg %p2764_p11 }
  0x1f   : > { %s2466_s20 = scalar_lea.hbm %s3298_s3, 128 }
  0x20   : > { %p2467_p13 = scmp.ne.s32.totalorder %s3298_s3, %s2466_s20  ;;  %p2473_p4 = scmp.lt.u32.totalorder %s2466_s20, %s3298_s3 }
  0x22   : > { %p2469_p1 = pnand %p2780_p0, %p2467_p13 }
  0x24   : > { %p2470_p2 = pneg %p2469_p1 }
  0x26   : > { %p2475_p5 = pnand %p2473_p4, %p2470_p2 }
  0x28   : > { %2478 = shalt.err (!%p2475_p5)
}
  0x29   : > { %s2479_s16 = scalar_lea.vmem %s221_s11, 128  ;;  %p2487_p3 = scmp.lt.s32.totalorder %s221_s11, %s221_s11 }
  0x2a   : > { %p2480_p7 = scmp.ne.s32.totalorder %s221_s11, %s2479_s16  ;;  %p2488_p6 = scmp.lt.s32.totalorder %s2479_s16, %s2479_s16 }
  0x2c   : > { %p2482_p9 = pnand %p2480_p7, %p2780_p0  ;;  %p2489_p8 = por %p2488_p6, %p2487_p3 }
  0x2e   : > { %p2483_p10 = pneg %p2482_p9 }
  0x30   : > { %p2490_p12 = pnand %p2489_p8, %p2483_p10 }
  0x32   : > { %2493 = shalt.err (!%p2490_p12)
}
  0x33   : > { %2329 = dma.hbm_to_vmem [thread:$0]  (!%p2764_p11), %s3298_s3, 128, %s221_s11, [#allocation6]  }
  0x34   : > { %s3300_s4 = sld [smem:[#allocation15_spill]] }
  0x3a   : > { %s2494_s21 = scalar_lea.hbm %s3300_s4, 128 }
  0x3b   : > { %p2495_p3 = scmp.ne.s32.totalorder %s3300_s4, %s2494_s21  ;;  %p2501_p12 = scmp.lt.u32.totalorder %s2494_s21, %s3300_s4 }
  0x3d   : > { %p2497_p6 = pnand %p2495_p3, %p2780_p0 }
  0x3f   : > { %p2498_p8 = pneg %p2497_p6 }
  0x41   : > { %p2503_p13 = pnand %p2501_p12, %p2498_p8 }
  0x43   : > { %2506 = shalt.err (!%p2503_p13)
}
  0x44   : > { %s2507_s11 = scalar_lea.vmem %s232_s15, 128  ;;  %p2515_p5 = scmp.lt.s32.totalorder %s232_s15, %s232_s15 }
  0x45   : > { %p2508_p1 = scmp.ne.s32.totalorder %s232_s15, %s2507_s11  ;;  %p2516_p7 = scmp.lt.s32.totalorder %s2507_s11, %s2507_s11 }
  0x47   : > { %p2510_p2 = pnand %p2508_p1, %p2780_p0  ;;  %p2517_p9 = por %p2516_p7, %p2515_p5 }
  0x49   : > { %p2511_p4 = pneg %p2510_p2 }
  0x4b   : > { %p2518_p10 = pnand %p2517_p9, %p2511_p4 }
  0x4d   : > { %2521 = shalt.err (!%p2518_p10)
}
  0x4e   : > { %2332 = dma.hbm_to_vmem [thread:$0]  (!%p2764_p11), %s3300_s4, 128, %s232_s15, [#allocation6]  }
  0x4f   : > { %s3301_s5 = sld [smem:[#allocation16_spill]] }
  0x55   : > { %s2522_s20 = scalar_lea.hbm %s3301_s5, 16 }
  0x56   : > { %p2523_p3 = scmp.ne.s32.totalorder %s3301_s5, %s2522_s20  ;;  %p2529_p12 = scmp.lt.u32.totalorder %s2522_s20, %s3301_s5 }
  0x58   : > { %p2525_p6 = pnand %p2523_p3, %p2780_p0 }
  0x5a   : > { %p2526_p8 = pneg %p2525_p6 }
  0x5c   : > { %p2531_p13 = pnand %p2529_p12, %p2526_p8 }
  0x5e   : > { %2534 = shalt.err (!%p2531_p13)
}
  0x5f   : > { %s2535_s15 = scalar_lea.vmem %s2796_s17, 16  ;;  %s2542_s11 = scalar_lea.vmem %s2796_s17, 32 }
  0x60   : > { %p2536_p1 = scmp.ne.s32.totalorder %s2796_s17, %s2535_s15  ;;  %p2543_p5 = scmp.lt.s32.totalorder %s2796_s17, %s2796_s17 }
  0x61   : > { %p2544_p7 = scmp.lt.s32.totalorder %s2542_s11, %s2535_s15 }
  0x62   : > { %p2538_p2 = pnand %p2536_p1, %p2780_p0 }
  0x63   : > { %p2545_p9 = por %p2544_p7, %p2543_p5 }
  0x64   : > { %p2539_p4 = pneg %p2538_p2 }
  0x66   : > { %p2546_p10 = pnand %p2545_p9, %p2539_p4 }
  0x68   : > { %2549 = shalt.err (!%p2546_p10)
}
  0x69   : > { %2335 = dma.hbm_to_vmem [thread:$0]  (!%p2764_p11), %s3301_s5, 16, %s2796_s17, [#allocation9]  }
  0x6a   : > { %s30_s10 = sadd.s32 1, %s2646_s26  ;;  %s33_s28 = sadd.s32 1, %s2650_s27 }
  0x6b   : > { %p31_p0 = scmp.ge.s32.totalorder %s30_s10, 3  ;;  %s253_s30 = sand.u32 1, %s2634_s23  }
  0x6c   : > { %s1868_s20 = sshll.u32 %s253_s30, 8  ;;  %s1870_s21 = sshll.u32 %s2646_s26, 1 }
  0x6d   : > { %s3317_s10 = smov (%p31_p0, %s30_s10), 0  ;;  %s3319_s28 = smov (!%p31_p0, %s33_s28), %s2650_s27 }
  0x6e   : > { %s38_s12 = ssub.s32 %s2646_s26, %s3317_s10  ;;  %p35_p3 = scmp.ge.s32.totalorder %s3319_s28, 3 }
  0x6f   : > { %s2311_s29 = smul.u32 192, %s2650_s27  ;;  %s257_s14 = scalar_lea.vmem [#allocation3], %s1868_s20 }
  0x70   : > { %s267_s17 = sshll.u32 %s257_s14, 4  ;;  %s3321_s28 = smov (%p35_p3, %s3319_s28), 0  ;;  %s2852_s17 = int_to_ptr.vmem [resolvable:$true] %s267_s17 }
  0x71   : > { %s264_s16 = sadd.s32 %s2311_s29, %s1870_s21  ;;  %s37_s15 = ssub.s32 %s2650_s27, %s3321_s28 }
  0x72   : > { %s1872_s11 = sshll.u32 %s264_s16, 6  ;;  %s39_s18 = sor.u32 %s38_s12, %s37_s15 }
  0x73   : > { %s2859_s4 = scalar_lea.hbm %s3276_s0, %s1872_s11  ;;  %p40_p11 = scmp.eq.s32.totalorder %s39_s18, 0 }
  0x74   : > { %s3302_s20 = sadd.s32 1, %s2634_s23  ;;  %s2866_s5 = scalar_lea.sflag [#allocation4], %s253_s30 }
  0x75   : > { %s2864_s14 = scalar_select %p40_p11, %s2634_s23, %s3302_s20  }
  0x76   : > { %s2550_s21 = scalar_lea.hbm %s2859_s4, 4096  ;;  %p3303_p8 = scmp.ne.s32.totalorder %s3297_s13, 0 }
  0x77   : > { %p2551_p6 = scmp.ne.s32.totalorder %s2859_s4, %s2550_s21  ;;  %s2555_s29 = scalar_lea.hbm %s3276_s0, 36864 }
  0x78   : > { %p2552_p12 = pneg %p3303_p8  ;;  %p2556_p2 = scmp.lt.u32.totalorder %s2859_s4, %s3276_s0 }
  0x79   : > { %p2557_p4 = scmp.lt.u32.totalorder %s2555_s29, %s2550_s21  ;;  %p2559_p7 = scmp.lt.u32.totalorder %s2550_s21, %s2859_s4 }
  0x7a   : > { %p2553_p13 = pnand %p2552_p12, %p2551_p6 }
  0x7b   : > { %p2558_p5 = por %p2557_p4, %p2556_p2 }
  0x7c   : > { %p2554_p1 = pneg %p2553_p13 }
  0x7d   : > { %p2560_p9 = por %p2559_p7, %p2558_p5 }
  0x7f   : > { %p2561_p10 = pnand %p2560_p9, %p2554_p1 }
  0x81   : > { %2564 = shalt.err (!%p2561_p10)
}
  0x82   : > { %s2565_s30 = scalar_lea.vmem %s2852_s17, 4096  ;;  %s2659_s11 = smov [#allocation3]  }
  0x83   : > { %p2566_p0 = scmp.ne.s32.totalorder %s2852_s17, %s2565_s30  ;;  %s2570_s18 = sshll.u32 %s2659_s11, 4  ;;  %s2571_s18 = int_to_ptr.vmem [resolvable:$false] %s2570_s18 }
  0x84   : > { %s2572_s19 = scalar_lea.vmem %s2571_s18, 8192  ;;  %p2573_p6 = scmp.lt.s32.totalorder %s2852_s17, %s2571_s18 }
  0x85   : > { %p2568_p3 = pnand %p2566_p0, %p2552_p12  ;;  %p2574_p13 = scmp.lt.s32.totalorder %s2572_s19, %s2565_s30 }
  0x87   : > { %p2569_p11 = pneg %p2568_p3  ;;  %p2575_p2 = por %p2574_p13, %p2573_p6 }
  0x89   : > { %p2576_p4 = pnand %p2575_p2, %p2569_p11 }
  0x8b   : > { %2579 = shalt.err (!%p2576_p4)
}
  0x8c   : > { %s2660_s20 = smov 384   ;;  %s2661_s21 = smov 128  }
  0x8d   : > { %s2662_s3 = smov 8   ;;  %p3304_p12 = scmp.ne.s32.totalorder %s3295_s9, 0 }
  0x8e   : > { %2339 = dma.hbm_to_vmem [thread:$0]  (!%p3303_p8), %s2859_s4, 4096, %s2852_s17, %s2866_s5, %s2660_s20, %s2661_s21, %s2662_s3  }
  0x8f   : > { %297 = sbr.rel (%p3304_p12) target bundleno = 747 (0x2eb), region = 44  ;;  %s299_s12 = sand.u32 (!%p3304_p12), 1, %s2630_s22  }
  0x90   : > { %s1874_s29 = sshll.u32 (!%p3304_p12), %s299_s12, 8  ;;  %s300_s16 = scalar_lea.sflag (!%p3304_p12), [#allocation4], %s299_s12 }
  0x91   : > { %s2897_s15 = scalar_lea.vmem (!%p3304_p12), [#allocation3], %s1874_s29  ;;  %p3305_p1 = scmp.ne.s32.totalorder (!%p3304_p12), %s3294_s8, 0 }
  0x96   : > { %2613 = dma.done.wait (%p3305_p1), %s300_s16, 4096  }
  0x97   : > { %2615 = vsyncadd (%p3305_p1), %s300_s16, 4294963200  ;;  %p3306_p5 = scmp.ne.s32.totalorder %s3293_s7, 0 }
  0x99   : > { %2617 = dma.done.wait (%p3306_p5), [#allocation6], 256  }
  0x9a   : > { %2619 = vsyncadd (%p3306_p5), [#allocation6], 4294967040 }
  0x9b   : > { %2621 = dma.done.wait (%p3306_p5), [#allocation9], 16  }
  0x9c   : > { %2623 = vsyncadd (%p3306_p5), [#allocation9], 4294967280  ;;  %s1878_s4 = sshll.u32 %s2638_s24, 5  ;;  %s1880_s5 = sshll.u32 %s2642_s25, 5 }
  0x9d   : > { %p357_p8 = scmp.lt.s32.totalorder %s1878_s4, 95  ;;  %p363_p7 = scmp.lt.s32.totalorder %s1880_s5, 95 }
  0x9e   : > { %p1884_p9 = scmp.ne.s32.totalorder %s2638_s24, 0 }
  0x9f   : > { %s3323_s4 = smov (!%p357_p8, %s1878_s4), 95  ;;  %s3325_s5 = smov (!%p363_p7, %s1880_s5), 95 }
  0xa0   : > { %s1879_s8 = sshll.u32 %s3323_s4, 3  ;;  %s1881_s30 = sshll.u32 %s3325_s5, 3  ;;  %vm379_vm0 = vcmask (!%p1884_p9), 64512   ;;  %v2663_v0 = vmov (!%p1884_p9), 0.0  }
  0xa1   : > { %s2916_s17 = scalar_lea.vmem %s3277_s1, %s1879_s8  ;;  %s2921_s7 = scalar_lea.vmem %s3278_s2, %s1881_s30  ;;  %380 = vst.msk [vmem:[#allocation2] sm:$0xff] (!%p1884_p9), %vm379_vm0, %v2663_v0  ;;  %381 = vst.msk [vmem:[#allocation2 + $0x8] sm:$0xff] (!%p1884_p9), %vm379_vm0, %v2663_v0 }
  0xa2   : > { %s2926_s25 = scalar_lea.vmem %s3282_s6, %s1881_s30  ;;  %378 = sbr.rel (%p1884_p9) target bundleno = 177 (0xb1), region = 64  ;;  %382 = vst.msk [vmem:[#allocation2 + $0x10] sm:$0xff] (!%p1884_p9), %vm379_vm0, %v2663_v0  ;;  %383 = vst.msk [vmem:[#allocation2 + $0x18] sm:$0xff] (!%p1884_p9), %vm379_vm0, %v2663_v0 }
  0xa3   : > { %384 = vst.msk [vmem:[#allocation2 + $0x20] sm:$0xff] (!%p1884_p9), %vm379_vm0, %v2663_v0  ;;  %385 = vst.msk [vmem:[#allocation2 + $0x28] sm:$0xff] (!%p1884_p9), %vm379_vm0, %v2663_v0 }
  0xa4   : > { %386 = vst.msk [vmem:[#allocation2 + $0x30] sm:$0xff] (!%p1884_p9), %vm379_vm0, %v2663_v0  ;;  %387 = vst.msk [vmem:[#allocation2 + $0x38] sm:$0xff] (!%p1884_p9), %vm379_vm0, %v2663_v0 }
  0xa5   : > { %388 = vst.msk [vmem:[#allocation2 + $0x40] sm:$0xff] (!%p1884_p9), %vm379_vm0, %v2663_v0  ;;  %389 = vst.msk [vmem:[#allocation2 + $0x48] sm:$0xff] (!%p1884_p9), %vm379_vm0, %v2663_v0 }
  0xa6   : > { %390 = vst.msk [vmem:[#allocation2 + $0x50] sm:$0xff] (!%p1884_p9), %vm379_vm0, %v2663_v0  ;;  %391 = vst.msk [vmem:[#allocation2 + $0x58] sm:$0xff] (!%p1884_p9), %vm379_vm0, %v2663_v0 }
  0xa7   : > { %392 = vst.msk [vmem:[#allocation2 + $0x60] sm:$0xff] (!%p1884_p9), %vm379_vm0, %v2663_v0  ;;  %393 = vst.msk [vmem:[#allocation2 + $0x68] sm:$0xff] (!%p1884_p9), %vm379_vm0, %v2663_v0 }
  0xa8   : > { %394 = vst.msk [vmem:[#allocation2 + $0x70] sm:$0xff] (!%p1884_p9), %vm379_vm0, %v2663_v0  ;;  %395 = vst.msk [vmem:[#allocation2 + $0x78] sm:$0xff] (!%p1884_p9), %vm379_vm0, %v2663_v0 }
  0xa9   : > { %396 = vst.msk [vmem:[#allocation2 + $0x80] sm:$0xff] %vm379_vm0, %v2663_v0  ;;  %397 = vst.msk [vmem:[#allocation2 + $0x88] sm:$0xff] %vm379_vm0, %v2663_v0 }
  0xaa   : > { %398 = vst.msk [vmem:[#allocation2 + $0x90] sm:$0xff] %vm379_vm0, %v2663_v0  ;;  %399 = vst.msk [vmem:[#allocation2 + $0x98] sm:$0xff] %vm379_vm0, %v2663_v0 }
  0xab   : > { %400 = vst.msk [vmem:[#allocation2 + $0xa0] sm:$0xff] %vm379_vm0, %v2663_v0  ;;  %401 = vst.msk [vmem:[#allocation2 + $0xa8] sm:$0xff] %vm379_vm0, %v2663_v0 }
  0xac   : > { %402 = vst.msk [vmem:[#allocation2 + $0xb0] sm:$0xff] %vm379_vm0, %v2663_v0  ;;  %403 = vst.msk [vmem:[#allocation2 + $0xb8] sm:$0xff] %vm379_vm0, %v2663_v0 }
  0xad   : > { %404 = vst.msk [vmem:[#allocation2 + $0xc0] sm:$0xff] %vm379_vm0, %v2663_v0  ;;  %405 = vst.msk [vmem:[#allocation2 + $0xc8] sm:$0xff] %vm379_vm0, %v2663_v0 }
  0xae   : > { %406 = vst.msk [vmem:[#allocation2 + $0xd0] sm:$0xff] %vm379_vm0, %v2663_v0  ;;  %407 = vst.msk [vmem:[#allocation2 + $0xd8] sm:$0xff] %vm379_vm0, %v2663_v0 }
  0xaf   : > { %408 = vst.msk [vmem:[#allocation2 + $0xe0] sm:$0xff] %vm379_vm0, %v2663_v0  ;;  %409 = vst.msk [vmem:[#allocation2 + $0xe8] sm:$0xff] %vm379_vm0, %v2663_v0 }
  0xb0   : > { %410 = vst.msk [vmem:[#allocation2 + $0xf0] sm:$0xff] %vm379_vm0, %v2663_v0  ;;  %411 = vst.msk [vmem:[#allocation2 + $0xf8] sm:$0xff] %vm379_vm0, %v2663_v0 }
  0xb1 PF: > { %v492_v1 = vld [vmem:[%s2916_s17 + $0x80] sm:$0xff]  ;;  %v493_v2 = vld [vmem:[%s2916_s17 + $0x88] sm:$0xff]  ;;  %v494_v6 = vld [vmem:[%s2916_s17 + $0x90] sm:$0xff]  ;;  %vm877_vm1 = vcmask 64512   ;;  %p1917_p10 = scmp.ne.s32.totalorder %s2638_s24, 2 }
  0xb2   : > { %v476_v3 = vld [vmem:[%s2916_s17] sm:$0xff]  ;;  %v516_v4 = vpack.c.bf16 %v493_v2, %v492_v1  ;;  %v477_v5 = vld [vmem:[%s2916_s17 + $0x8] sm:$0xff]  ;;  %v495_v7 = vld [vmem:[%s2916_s17 + $0x98] sm:$0xff]  ;;  %vm1693_vm2 = vcmask (!%p1917_p10), 130048  }
  0xb3   : > { %v508_v8 = vpack.c.bf16 %v477_v5, %v476_v3  ;;  %v517_v9 = vpack.c.bf16 %v495_v7, %v494_v6  ;;  %v478_v10 = vld [vmem:[%s2916_s17 + $0x10] sm:$0xff]  ;;  %v479_v11 = vld [vmem:[%s2916_s17 + $0x18] sm:$0xff]  ;;  %v496_v12 = vld [vmem:[%s2916_s17 + $0xa0] sm:$0xff] }
  0xb4   : > { %1985 = vmatprep.subr.bf16.mxu0 %v516_v4  ;;  %2263 = vmatprep.subr.bf16.mxu1 %v516_v4  ;;  %v497_v13 = vld [vmem:[%s2916_s17 + $0xa8] sm:$0xff]  ;;  %v509_v14 = vpack.c.bf16 %v479_v11, %v478_v10  ;;  %v480_v16 = vld [vmem:[%s2916_s17 + $0x20] sm:$0xff]  ;;  %v498_v18 = vld [vmem:[%s2916_s17 + $0xb0] sm:$0xff] }
  0xb5   : > { %1986 = vmatpush3.bf16.msra.mxu0 %v508_v8  ;;  %2271 = vmatpush3.bf16.msra.mxu1 %v508_v8  ;;  %v518_v15 = vpack.c.bf16 %v497_v13, %v496_v12  ;;  %v481_v17 = vld [vmem:[%s2916_s17 + $0x28] sm:$0xff]  ;;  %v499_v19 = vld [vmem:[%s2916_s17 + $0xb8] sm:$0xff]  ;;  %v482_v22 = vld [vmem:[%s2916_s17 + $0x30] sm:$0xff] }
  0xb6   : > { %1987 = vmatprep.subr.bf16.mxu0 %v517_v9  ;;  %2264 = vmatprep.subr.bf16.mxu1 %v517_v9  ;;  %v510_v20 = vpack.c.bf16 %v481_v17, %v480_v16  ;;  %v519_v21 = vpack.c.bf16 %v499_v19, %v498_v18  ;;  %v483_v23 = vld [vmem:[%s2916_s17 + $0x38] sm:$0xff]  ;;  %v500_v24 = vld [vmem:[%s2916_s17 + $0xc0] sm:$0xff]  ;;  %v501_v25 = vld [vmem:[%s2916_s17 + $0xc8] sm:$0xff] }
  0xb7   : > { %v484_v26 = vld [vmem:[%s2916_s17 + $0x40] sm:$0xff]  ;;  %v485_v27 = vld [vmem:[%s2916_s17 + $0x48] sm:$0xff]  ;;  %v511_v29 = vpack.c.bf16 %v483_v23, %v482_v22  ;;  %v502_v30 = vld [vmem:[%s2916_s17 + $0xd0] sm:$0xff]  ;;  %v520_v31 = vpack.c.bf16 %v501_v25, %v500_v24 }
  0xb8   : > { %v2420_v28 = vld [vmem:[%s2897_s15 + $0x4] ss:$8 sps:$4 sm:$0xff]   ;;  %v503_v33 = vld [vmem:[%s2916_s17 + $0xd8] sm:$0xff]  ;;  %v512_v34 = vpack.c.bf16 %v485_v27, %v484_v26  ;;  %v486_v35 = vld [vmem:[%s2916_s17 + $0x50] sm:$0xff] }
  0xb9   : > { %1988 = vmatpush3.bf16.msra.mxu0 %v509_v14  ;;  %2272 = vmatpush3.bf16.msra.mxu1 %v509_v14  ;;  %v2423_v32 = vld [vmem:[%s2897_s15 + $0x84] ss:$8 sps:$4 sm:$0xff]   ;;  %v521_v36 = vpack.c.bf16 %v503_v33, %v502_v30  ;;  %v487_v37 = vld [vmem:[%s2916_s17 + $0x58] sm:$0xff]  ;;  %v506_v44 = vld [vmem:[%s2916_s17 + $0xf0] sm:$0xff] }
  0xba   : > { %1989 = vmatprep.subr.bf16.mxu0 %v518_v15  ;;  %2265 = vmatprep.subr.bf16.mxu1 %v518_v15  ;;  %v504_v38 = vld [vmem:[%s2916_s17 + $0xe0] sm:$0xff]  ;;  %v505_v39 = vld [vmem:[%s2916_s17 + $0xe8] sm:$0xff]  ;;  %v513_v40 = vpack.c.bf16 %v487_v37, %v486_v35  ;;  %v507_v45 = vld [vmem:[%s2916_s17 + $0xf8] sm:$0xff] }
  0xbb   : > { %716 = vmatprep.mubr.bf16.mxu0 %v2420_v28  ;;  %780 = vmatprep.mubr.bf16.mxu1 %v2423_v32  ;;  %v488_v41 = vld [vmem:[%s2916_s17 + $0x60] sm:$0xff]  ;;  %v489_v42 = vld [vmem:[%s2916_s17 + $0x68] sm:$0xff]  ;;  %v522_v43 = vpack.c.bf16 %v505_v39, %v504_v38  ;;  %v490_v47 = vld [vmem:[%s2916_s17 + $0x70] sm:$0xff]  ;;  %v523_v48 = vpack.c.bf16 %v507_v45, %v506_v44 }
  0xbc   : > { %v514_v46 = vpack.c.bf16 %v489_v42, %v488_v41  ;;  %v491_v49 = vld [vmem:[%s2916_s17 + $0x78] sm:$0xff]  ;;  %v2418_v51 = vld [vmem:[%s2897_s15] ss:$8 sps:$4 sm:$0xff]   ;;  %v2430_v57 = vld [vmem:[%s2897_s15 + $0x24] ss:$8 sps:$4 sm:$0xff]  }
  0xbd   : > { %1990 = vmatpush3.bf16.msra.mxu0 %v510_v20  ;;  %2273 = vmatpush3.bf16.msra.mxu1 %v510_v20  ;;  %v515_v50 = vpack.c.bf16 %v491_v49, %v490_v47  ;;  %v2421_v52 = vld [vmem:[%s2897_s15 + $0x80] ss:$8 sps:$4 sm:$0xff]   ;;  %v2424_v53 = vld [vmem:[%s2897_s15 + $0x14] ss:$8 sps:$4 sm:$0xff]   ;;  %v2428_v55 = vld [vmem:[%s2897_s15 + $0x10] ss:$8 sps:$4 sm:$0xff]  }
  0xbe   : > { %1991 = vmatprep.subr.bf16.mxu0 %v519_v21  ;;  %2266 = vmatprep.subr.bf16.mxu1 %v519_v21  ;;  %v2426_v54 = vld [vmem:[%s2897_s15 + $0x94] ss:$8 sps:$4 sm:$0xff]   ;;  %v2429_v56 = vld [vmem:[%s2897_s15 + $0x90] ss:$8 sps:$4 sm:$0xff]   ;;  %v2432_v58 = vld [vmem:[%s2897_s15 + $0xa4] ss:$8 sps:$4 sm:$0xff]  }
  0xbf   : > { %v2434_v59 = vld [vmem:[%s2897_s15 + $0x20] ss:$8 sps:$4 sm:$0xff]   ;;  %v2436_v61 = vld [vmem:[%s2897_s15 + $0x34] ss:$8 sps:$4 sm:$0xff]   ;;  %v2440_v63 = vld [vmem:[%s2897_s15 + $0x30] ss:$8 sps:$4 sm:$0xff]  }
  0xc0   : > { %v2435_v60 = vld [vmem:[%s2897_s15 + $0xa0] ss:$8 sps:$4 sm:$0xff]   ;;  %v2438_v62 = vld [vmem:[%s2897_s15 + $0xb4] ss:$8 sps:$4 sm:$0xff]   ;;  %v2441_v0 = vld [vmem:[%s2897_s15 + $0xb0] ss:$8 sps:$4 sm:$0xff]  }
  0xc1   : > { %1992 = vmatpush3.bf16.msra.mxu0 %v511_v29  ;;  %2274 = vmatpush3.bf16.msra.mxu1 %v511_v29  ;;  %v2442_v1 = vld [vmem:[%s2897_s15 + $0x44] ss:$8 sps:$4 sm:$0xff]   ;;  %v2446_v3 = vld [vmem:[%s2897_s15 + $0x40] ss:$8 sps:$4 sm:$0xff]   ;;  %v2448_v5 = vld [vmem:[%s2897_s15 + $0x54] ss:$8 sps:$4 sm:$0xff]  }
  0xc2   : > { %1993 = vmatprep.subr.bf16.mxu0 %v520_v31  ;;  %2267 = vmatprep.subr.bf16.mxu1 %v520_v31  ;;  %v2444_v2 = vld [vmem:[%s2897_s15 + $0xc4] ss:$8 sps:$4 sm:$0xff]   ;;  %v2447_v4 = vld [vmem:[%s2897_s15 + $0xc0] ss:$8 sps:$4 sm:$0xff]   ;;  %v2450_v6 = vld [vmem:[%s2897_s15 + $0xd4] ss:$8 sps:$4 sm:$0xff]  }
  0xc3   : > { %v2452_v7 = vld [vmem:[%s2897_s15 + $0x50] ss:$8 sps:$4 sm:$0xff]   ;;  %v2454_v9 = vld [vmem:[%s2897_s15 + $0x64] ss:$8 sps:$4 sm:$0xff]   ;;  %v2458_v11 = vld [vmem:[%s2897_s15 + $0x60] ss:$8 sps:$4 sm:$0xff]  }
  0xc4   : > { %v2453_v8 = vld [vmem:[%s2897_s15 + $0xd0] ss:$8 sps:$4 sm:$0xff]   ;;  %v2456_v10 = vld [vmem:[%s2897_s15 + $0xe4] ss:$8 sps:$4 sm:$0xff]   ;;  %v2459_v12 = vld [vmem:[%s2897_s15 + $0xe0] ss:$8 sps:$4 sm:$0xff]  }
  0xc5   : > { %1994 = vmatpush3.bf16.msra.mxu0 %v512_v34  ;;  %2275 = vmatpush3.bf16.msra.mxu1 %v512_v34  ;;  %v2460_v13 = vld [vmem:[%s2897_s15 + $0x74] ss:$8 sps:$4 sm:$0xff]   ;;  %v2464_v15 = vld [vmem:[%s2897_s15 + $0x70] ss:$8 sps:$4 sm:$0xff]   ;;  %v412_v19 = vld [vmem:[#allocation2] sm:$0xff] }
  0xc6   : > { %1995 = vmatprep.subr.bf16.mxu0 %v521_v36  ;;  %2268 = vmatprep.subr.bf16.mxu1 %v521_v36  ;;  %v2462_v14 = vld [vmem:[%s2897_s15 + $0xf4] ss:$8 sps:$4 sm:$0xff]   ;;  %v2465_v16 = vld [vmem:[%s2897_s15 + $0xf0] ss:$8 sps:$4 sm:$0xff]   ;;  %v428_v21 = vld [vmem:[#allocation2 + $0x80] sm:$0xff] }
  0xc7   : > { %v413_v27 = vld [vmem:[#allocation2 + $0x8] sm:$0xff]  ;;  %v414_v39 = vld [vmem:[#allocation2 + $0x10] sm:$0xff]  ;;  %v415_v47 = vld [vmem:[#allocation2 + $0x18] sm:$0xff] }
  0xc8   : > { %v429_v29 = vld [vmem:[#allocation2 + $0x88] sm:$0xff]  ;;  %v430_v41 = vld [vmem:[#allocation2 + $0x90] sm:$0xff]  ;;  %v431_v49 = vld [vmem:[#allocation2 + $0x98] sm:$0xff] }
  0xc9   : > { %1996 = vmatpush3.bf16.msra.mxu0 %v513_v40  ;;  %2276 = vmatpush3.bf16.msra.mxu1 %v513_v40 }
  0xca   : > { %1997 = vmatprep.subr.bf16.mxu0 %v522_v43  ;;  %2269 = vmatprep.subr.bf16.mxu1 %v522_v43 }
  0xcd   : > { %1998 = vmatpush3.bf16.msra.mxu0 %v514_v46  ;;  %2277 = vmatpush3.bf16.msra.mxu1 %v514_v46 }
  0xce   : > { %1999 = vmatprep.subr.bf16.mxu0 %v523_v48  ;;  %2270 = vmatprep.subr.bf16.mxu1 %v523_v48 }
  0xd1   : > { %2000 = vmatpush3.bf16.msra.mxu0 %v515_v50  ;;  %2278 = vmatpush3.bf16.msra.mxu1 %v515_v50 }
  0xd4   : > { %717 = vmatmul.mubr.bf16.vlgmr.msra.gmra.mrb[0].mxu0 %v2418_v51  ;;  %781 = vmatmul.mubr.bf16.vlgmr.msra.gmra.mrb[0].mxu1 %v2421_v52 }
  0xd5   : > { %724 = vmatprep.mubr.bf16.mxu0 %v2424_v53  ;;  %788 = vmatprep.mubr.bf16.mxu1 %v2426_v54 }
  0xdc   : > { %725 = vmatmul.mubr.bf16.gmra.mrb[4].mxu0 %v2428_v55  ;;  %789 = vmatmul.mubr.bf16.gmra.mrb[4].mxu1 %v2429_v56 }
  0xdd   : > { %732 = vmatprep.mubr.bf16.mxu0 %v2430_v57  ;;  %796 = vmatprep.mubr.bf16.mxu1 %v2432_v58 }
  0xe4   : > { %733 = vmatmul.mubr.bf16.gmra.mrb[8].mxu0 %v2434_v59  ;;  %797 = vmatmul.mubr.bf16.gmra.mrb[8].mxu1 %v2435_v60  ;;  %v416_v59 = vld [vmem:[#allocation2 + $0x20] sm:$0xff] }
  0xe5   : > { %740 = vmatprep.mubr.bf16.mxu0 %v2436_v61  ;;  %804 = vmatprep.mubr.bf16.mxu1 %v2438_v62  ;;  %v432_v61 = vld [vmem:[#allocation2 + $0xa0] sm:$0xff] }
  0xec   : > { %741 = vmatmul.mubr.bf16.gmra.mrb[12].mxu0 %v2440_v63  ;;  %805 = vmatmul.mubr.bf16.gmra.mrb[12].mxu1 %v2441_v0 }
  0xed   : > { %748 = vmatprep.mubr.bf16.mxu0 %v2442_v1  ;;  %812 = vmatprep.mubr.bf16.mxu1 %v2444_v2 }
  0xf4   : > { %749 = vmatmul.mubr.bf16.gmra.mrb[16].mxu0 %v2446_v3  ;;  %813 = vmatmul.mubr.bf16.gmra.mrb[16].mxu1 %v2447_v4  ;;  %v417_v3 = vld [vmem:[#allocation2 + $0x28] sm:$0xff] }
  0xf5   : > { %756 = vmatprep.mubr.bf16.mxu0 %v2448_v5  ;;  %820 = vmatprep.mubr.bf16.mxu1 %v2450_v6  ;;  %v433_v5 = vld [vmem:[#allocation2 + $0xa8] sm:$0xff] }
  0xfc   : > { %757 = vmatmul.mubr.bf16.gmra.mrb[20].mxu0 %v2452_v7  ;;  %821 = vmatmul.mubr.bf16.gmra.mrb[20].mxu1 %v2453_v8 }
  0xfd   : > { %764 = vmatprep.mubr.bf16.mxu0 %v2454_v9  ;;  %828 = vmatprep.mubr.bf16.mxu1 %v2456_v10 }
 0x104   : > { %765 = vmatmul.mubr.bf16.gmra.mrb[24].mxu0 %v2458_v11  ;;  %829 = vmatmul.mubr.bf16.gmra.mrb[24].mxu1 %v2459_v12 }
 0x105   : > { %772 = vmatprep.mubr.bf16.mxu0 %v2460_v13  ;;  %836 = vmatprep.mubr.bf16.mxu1 %v2462_v14 }
 0x10c   : > { %773 = vmatmul.mubr.bf16.gmra.mrb[28].mxu0 %v2464_v15  ;;  %837 = vmatmul.mubr.bf16.gmra.mrb[28].mxu1 %v2465_v16  ;;  %v418_v15 = vld [vmem:[#allocation2 + $0x30] sm:$0xff] }
 0x1a7   : > { %v2001_v17 = vpop.f32.mrb[0].mxu0  ;;  %v2049_v18 = vpop.f32.mrb[0].mxu1 }
 0x1a8   : > { %v2002_v20 = vpop.f32.mrb[1].mxu0  ;;  %v2050_v22 = vpop.f32.mrb[1].mxu1 }
 0x1a9   : > { %v2003_v23 = vadd.f32 %v2002_v20, %v2001_v17  ;;  %v2051_v24 = vadd.f32 %v2050_v22, %v2049_v18  ;;  %v2004_v25 = vpop.f32.mrb[2].mxu0  ;;  %v2052_v26 = vpop.f32.mrb[2].mxu1  ;;  %v434_v17 = vld [vmem:[#allocation2 + $0xb0] sm:$0xff] }
 0x1aa   : > { %v2005_v28 = vpop.f32.mrb[3].mxu0  ;;  %v2053_v30 = vpop.f32.mrb[3].mxu1 }
 0x1ab   : > { %v845_v31 = vadd.f32 %v2003_v23, %v412_v19  ;;  %v861_v32 = vadd.f32 %v2051_v24, %v428_v21  ;;  %v2006_v33 = vadd.f32 %v2005_v28, %v2004_v25  ;;  %v2054_v34 = vadd.f32 %v2053_v30, %v2052_v26  ;;  %v419_v23 = vld [vmem:[#allocation2 + $0x38] sm:$0xff] }
 0x1ac   : > { %v435_v25 = vld [vmem:[#allocation2 + $0xb8] sm:$0xff] }
 0x1ad   : > { %878 = vst.msk [vmem:[#allocation2] sm:$0xff] %vm877_vm1, %v845_v31  ;;  %894 = vst.msk [vmem:[#allocation2 + $0x80] sm:$0xff] %vm877_vm1, %v861_v32  ;;  %v846_v35 = vadd.f32 %v2006_v33, %v413_v27  ;;  %v862_v36 = vadd.f32 %v2054_v34, %v429_v29 }
 0x1af   : > { %879 = vst.msk [vmem:[#allocation2 + $0x8] sm:$0xff] %vm877_vm1, %v846_v35  ;;  %895 = vst.msk [vmem:[#allocation2 + $0x88] sm:$0xff] %vm877_vm1, %v862_v36  ;;  %v2007_v37 = vpop.f32.mrb[4].mxu0  ;;  %v2055_v38 = vpop.f32.mrb[4].mxu1  ;;  %v420_v35 = vld [vmem:[#allocation2 + $0x40] sm:$0xff] }
 0x1b0   : > { %v2008_v40 = vpop.f32.mrb[5].mxu0  ;;  %v2056_v42 = vpop.f32.mrb[5].mxu1 }
 0x1b1   : > { %v2009_v43 = vadd.f32 %v2008_v40, %v2007_v37  ;;  %v2057_v44 = vadd.f32 %v2056_v42, %v2055_v38  ;;  %v2010_v45 = vpop.f32.mrb[6].mxu0  ;;  %v2058_v46 = vpop.f32.mrb[6].mxu1  ;;  %v436_v37 = vld [vmem:[#allocation2 + $0xc0] sm:$0xff] }
 0x1b2   : > { %v2011_v48 = vpop.f32.mrb[7].mxu0  ;;  %v2059_v50 = vpop.f32.mrb[7].mxu1 }
 0x1b3   : > { %v847_v51 = vadd.f32 %v2009_v43, %v414_v39  ;;  %v863_v52 = vadd.f32 %v2057_v44, %v430_v41  ;;  %v2012_v53 = vadd.f32 %v2011_v48, %v2010_v45  ;;  %v2060_v54 = vadd.f32 %v2059_v50, %v2058_v46  ;;  %v421_v43 = vld [vmem:[#allocation2 + $0x48] sm:$0xff] }
 0x1b4   : > { %v437_v45 = vld [vmem:[#allocation2 + $0xc8] sm:$0xff] }
 0x1b5   : > { %880 = vst.msk [vmem:[#allocation2 + $0x10] sm:$0xff] %vm877_vm1, %v847_v51  ;;  %896 = vst.msk [vmem:[#allocation2 + $0x90] sm:$0xff] %vm877_vm1, %v863_v52  ;;  %v848_v55 = vadd.f32 %v2012_v53, %v415_v47  ;;  %v864_v56 = vadd.f32 %v2060_v54, %v431_v49 }
 0x1b7   : > { %881 = vst.msk [vmem:[#allocation2 + $0x18] sm:$0xff] %vm877_vm1, %v848_v55  ;;  %897 = vst.msk [vmem:[#allocation2 + $0x98] sm:$0xff] %vm877_vm1, %v864_v56  ;;  %v2013_v57 = vpop.f32.mrb[8].mxu0  ;;  %v2061_v58 = vpop.f32.mrb[8].mxu1  ;;  %v422_v55 = vld [vmem:[#allocation2 + $0x50] sm:$0xff] }
 0x1b8   : > { %v2014_v60 = vpop.f32.mrb[9].mxu0  ;;  %v2062_v62 = vpop.f32.mrb[9].mxu1 }
 0x1b9   : > { %v2015_v63 = vadd.f32 %v2014_v60, %v2013_v57  ;;  %v2063_v0 = vadd.f32 %v2062_v62, %v2061_v58  ;;  %v2016_v1 = vpop.f32.mrb[10].mxu0  ;;  %v2064_v2 = vpop.f32.mrb[10].mxu1  ;;  %v438_v57 = vld [vmem:[#allocation2 + $0xd0] sm:$0xff] }
 0x1ba   : > { %v2017_v4 = vpop.f32.mrb[11].mxu0  ;;  %v2065_v6 = vpop.f32.mrb[11].mxu1 }
 0x1bb   : > { %v849_v7 = vadd.f32 %v2015_v63, %v416_v59  ;;  %v865_v8 = vadd.f32 %v2063_v0, %v432_v61  ;;  %v2018_v9 = vadd.f32 %v2017_v4, %v2016_v1  ;;  %v2066_v10 = vadd.f32 %v2065_v6, %v2064_v2  ;;  %v423_v63 = vld [vmem:[#allocation2 + $0x58] sm:$0xff] }
 0x1bc   : > { %v439_v1 = vld [vmem:[#allocation2 + $0xd8] sm:$0xff] }
 0x1bd   : > { %882 = vst.msk [vmem:[#allocation2 + $0x20] sm:$0xff] %vm877_vm1, %v849_v7  ;;  %898 = vst.msk [vmem:[#allocation2 + $0xa0] sm:$0xff] %vm877_vm1, %v865_v8  ;;  %v850_v11 = vadd.f32 %v2018_v9, %v417_v3  ;;  %v866_v12 = vadd.f32 %v2066_v10, %v433_v5 }
 0x1bf   : > { %883 = vst.msk [vmem:[#allocation2 + $0x28] sm:$0xff] %vm877_vm1, %v850_v11  ;;  %899 = vst.msk [vmem:[#allocation2 + $0xa8] sm:$0xff] %vm877_vm1, %v866_v12  ;;  %v2019_v13 = vpop.f32.mrb[12].mxu0  ;;  %v2067_v14 = vpop.f32.mrb[12].mxu1  ;;  %v424_v11 = vld [vmem:[#allocation2 + $0x60] sm:$0xff] }
 0x1c0   : > { %v2020_v16 = vpop.f32.mrb[13].mxu0  ;;  %v2068_v18 = vpop.f32.mrb[13].mxu1 }
 0x1c1   : > { %v2021_v19 = vadd.f32 %v2020_v16, %v2019_v13  ;;  %v2069_v20 = vadd.f32 %v2068_v18, %v2067_v14  ;;  %v2022_v21 = vpop.f32.mrb[14].mxu0  ;;  %v2070_v22 = vpop.f32.mrb[14].mxu1  ;;  %v440_v13 = vld [vmem:[#allocation2 + $0xe0] sm:$0xff] }
 0x1c2   : > { %v2023_v24 = vpop.f32.mrb[15].mxu0  ;;  %v2071_v26 = vpop.f32.mrb[15].mxu1 }
 0x1c3   : > { %v851_v27 = vadd.f32 %v2021_v19, %v418_v15  ;;  %v867_v28 = vadd.f32 %v2069_v20, %v434_v17  ;;  %v2024_v29 = vadd.f32 %v2023_v24, %v2022_v21  ;;  %v2072_v30 = vadd.f32 %v2071_v26, %v2070_v22  ;;  %v425_v19 = vld [vmem:[#allocation2 + $0x68] sm:$0xff] }
 0x1c4   : > { %v441_v21 = vld [vmem:[#allocation2 + $0xe8] sm:$0xff] }
 0x1c5   : > { %884 = vst.msk [vmem:[#allocation2 + $0x30] sm:$0xff] %vm877_vm1, %v851_v27  ;;  %900 = vst.msk [vmem:[#allocation2 + $0xb0] sm:$0xff] %vm877_vm1, %v867_v28  ;;  %v852_v31 = vadd.f32 %v2024_v29, %v419_v23  ;;  %v868_v32 = vadd.f32 %v2072_v30, %v435_v25 }
 0x1c7   : > { %885 = vst.msk [vmem:[#allocation2 + $0x38] sm:$0xff] %vm877_vm1, %v852_v31  ;;  %901 = vst.msk [vmem:[#allocation2 + $0xb8] sm:$0xff] %vm877_vm1, %v868_v32  ;;  %v2025_v33 = vpop.f32.mrb[16].mxu0  ;;  %v2073_v34 = vpop.f32.mrb[16].mxu1  ;;  %v426_v31 = vld [vmem:[#allocation2 + $0x70] sm:$0xff] }
 0x1c8   : > { %v2026_v36 = vpop.f32.mrb[17].mxu0  ;;  %v2074_v38 = vpop.f32.mrb[17].mxu1 }
 0x1c9   : > { %v2027_v39 = vadd.f32 %v2026_v36, %v2025_v33  ;;  %v2075_v40 = vadd.f32 %v2074_v38, %v2073_v34  ;;  %v2028_v41 = vpop.f32.mrb[18].mxu0  ;;  %v2076_v42 = vpop.f32.mrb[18].mxu1  ;;  %v442_v33 = vld [vmem:[#allocation2 + $0xf0] sm:$0xff] }
 0x1ca   : > { %v2029_v44 = vpop.f32.mrb[19].mxu0  ;;  %v2077_v46 = vpop.f32.mrb[19].mxu1 }
 0x1cb   : > { %v853_v47 = vadd.f32 %v2027_v39, %v420_v35  ;;  %v869_v48 = vadd.f32 %v2075_v40, %v436_v37  ;;  %v2030_v49 = vadd.f32 %v2029_v44, %v2028_v41  ;;  %v2078_v50 = vadd.f32 %v2077_v46, %v2076_v42  ;;  %v427_v39 = vld [vmem:[#allocation2 + $0x78] sm:$0xff] }
 0x1cc   : > { %v443_v41 = vld [vmem:[#allocation2 + $0xf8] sm:$0xff] }
 0x1cd   : > { %886 = vst.msk [vmem:[#allocation2 + $0x40] sm:$0xff] %vm877_vm1, %v853_v47  ;;  %902 = vst.msk [vmem:[#allocation2 + $0xc0] sm:$0xff] %vm877_vm1, %v869_v48  ;;  %v854_v51 = vadd.f32 %v2030_v49, %v421_v43  ;;  %v870_v52 = vadd.f32 %v2078_v50, %v437_v45  ;;  %v979_v49 = vld [vmem:[#allocation7] sm:$0xff] (!%p1917_p10)  ;;  %v946_v50 = vld [vmem:[#allocation5] sm:$0xff] (!%p1917_p10) }
 0x1ce   : > { %2163 = vmatprep.subr.mxu1 (!%p1917_p10), %v979_v49  ;;  %2213 = vmatprep.subr.mxu0 (!%p1917_p10), %v946_v50 }
 0x1cf   : > { %887 = vst.msk [vmem:[#allocation2 + $0x48] sm:$0xff] %vm877_vm1, %v854_v51  ;;  %903 = vst.msk [vmem:[#allocation2 + $0xc8] sm:$0xff] %vm877_vm1, %v870_v52  ;;  %v2031_v53 = vpop.f32.mrb[20].mxu0  ;;  %v2079_v54 = vpop.f32.mrb[20].mxu1  ;;  %v947_v51 = vld [vmem:[%s2921_s7] sm:$0xff] (!%p1917_p10)  ;;  %2164 = vmatpush3.msra.mxu1 (!%p1917_p10), %v979_v49  ;;  %2214 = vmatpush3.msra.mxu0 (!%p1917_p10), %v946_v50  ;;  %v978_v49 = vld [vmem:[%s2921_s7 + $0xf8] sm:$0xff] (!%p1917_p10) }
 0x1d0   : > { %v2032_v56 = vpop.f32.mrb[21].mxu0  ;;  %v2080_v58 = vpop.f32.mrb[21].mxu1  ;;  %v914_v52 = vld [vmem:[#allocation2] sm:$0xff] (!%p1917_p10)  ;;  %2165 = vmatprep.mubr.msk.f32.mxu1 (!%p1917_p10), %vm877_vm1, %v947_v51 }
 0x1d1   : > { %v2033_v59 = vadd.f32 %v2032_v56, %v2031_v53  ;;  %v2081_v60 = vadd.f32 %v2080_v58, %v2079_v54  ;;  %v2034_v61 = vpop.f32.mrb[22].mxu0  ;;  %v2082_v62 = vpop.f32.mrb[22].mxu1  ;;  %v948_v53 = vld [vmem:[%s2921_s7 + $0x8] sm:$0xff] (!%p1917_p10)  ;;  %v916_v56 = vld [vmem:[#allocation2 + $0x10] sm:$0xff] (!%p1917_p10)  ;;  %2215 = vmatprep.mubr.msk.f32.mxu0 (!%p1917_p10), %vm877_vm1, %v914_v52  ;;  %v917_v58 = vld [vmem:[#allocation2 + $0x18] sm:$0xff] (!%p1917_p10) }
 0x1d2   : > { %v2035_v0 = vpop.f32.mrb[23].mxu0  ;;  %v2083_v2 = vpop.f32.mrb[23].mxu1  ;;  %v915_v54 = vld [vmem:[#allocation2 + $0x8] sm:$0xff] (!%p1917_p10)  ;;  %2166 = vmatmul.mubr.msk.f32.vlgmr.msra.gmra.mrb[0].mxu1 (!%p1917_p10), %vm877_vm1, %v948_v53  ;;  %v3154_v53 = vld [vmem:[#allocation8] ss:$0 sm:$0xff] (!%p1917_p10) }
 0x1d3   : > { %v855_v3 = vadd.f32 %v2033_v59, %v422_v55  ;;  %v871_v4 = vadd.f32 %v2081_v60, %v438_v57  ;;  %v2036_v5 = vadd.f32 %v2035_v0, %v2034_v61  ;;  %v2084_v6 = vadd.f32 %v2083_v2, %v2082_v62  ;;  %v949_v55 = vld [vmem:[%s2921_s7 + $0x10] sm:$0xff] (!%p1917_p10)  ;;  %2216 = vmatmul.mubr.msk.f32.vlgmr.msra.gmra.mrb[0].mxu0 (!%p1917_p10), %vm877_vm1, %v915_v54  ;;  %v950_v57 = vld [vmem:[%s2921_s7 + $0x18] sm:$0xff] (!%p1917_p10)  ;;  %v951_v59 = vld [vmem:[%s2921_s7 + $0x20] sm:$0xff] (!%p1917_p10) }
 0x1d4   : > { %2168 = vmatprep.mubr.msk.f32.mxu1 (!%p1917_p10), %vm877_vm1, %v949_v55  ;;  %2218 = vmatprep.mubr.msk.f32.mxu0 (!%p1917_p10), %vm877_vm1, %v916_v56  ;;  %v918_v60 = vld [vmem:[#allocation2 + $0x20] sm:$0xff] (!%p1917_p10)  ;;  %v952_v61 = vld [vmem:[%s2921_s7 + $0x28] sm:$0xff] (!%p1917_p10)  ;;  %v920_v0 = vld [vmem:[#allocation2 + $0x30] sm:$0xff] (!%p1917_p10) }
 0x1d5   : > { %888 = vst.msk [vmem:[#allocation2 + $0x50] sm:$0xff] %vm877_vm1, %v855_v3  ;;  %904 = vst.msk [vmem:[#allocation2 + $0xd0] sm:$0xff] %vm877_vm1, %v871_v4  ;;  %v856_v7 = vadd.f32 %v2036_v5, %v423_v63  ;;  %v872_v8 = vadd.f32 %v2084_v6, %v439_v1  ;;  %v919_v62 = vld [vmem:[#allocation2 + $0x28] sm:$0xff] (!%p1917_p10)  ;;  %v953_v63 = vld [vmem:[%s2921_s7 + $0x30] sm:$0xff] (!%p1917_p10) }
 0x1d6   : > { %2169 = vmatmul.mubr.msk.f32.gmra.mrb[2].mxu1 (!%p1917_p10), %vm877_vm1, %v950_v57  ;;  %v954_v1 = vld [vmem:[%s2921_s7 + $0x38] sm:$0xff] (!%p1917_p10)  ;;  %v955_v3 = vld [vmem:[%s2921_s7 + $0x40] sm:$0xff] (!%p1917_p10)  ;;  %v956_v5 = vld [vmem:[%s2921_s7 + $0x48] sm:$0xff] (!%p1917_p10) }
 0x1d7   : > { %889 = vst.msk [vmem:[#allocation2 + $0x58] sm:$0xff] %vm877_vm1, %v856_v7  ;;  %905 = vst.msk [vmem:[#allocation2 + $0xd8] sm:$0xff] %vm877_vm1, %v872_v8  ;;  %v2037_v9 = vpop.f32.mrb[24].mxu0  ;;  %v2085_v10 = vpop.f32.mrb[24].mxu1  ;;  %2219 = vmatmul.mubr.msk.f32.gmra.mrb[2].mxu0 (!%p1917_p10), %vm877_vm1, %v917_v58  ;;  %2171 = vmatprep.mubr.msk.f32.mxu1 (!%p1917_p10), %vm877_vm1, %v951_v59  ;;  %v921_v2 = vld [vmem:[#allocation2 + $0x38] sm:$0xff] (!%p1917_p10)  ;;  %v922_v4 = vld [vmem:[#allocation2 + $0x40] sm:$0xff] (!%p1917_p10) }
 0x1d8   : > { %v2038_v12 = vpop.f32.mrb[25].mxu0  ;;  %v2086_v14 = vpop.f32.mrb[25].mxu1  ;;  %2221 = vmatprep.mubr.msk.f32.mxu0 (!%p1917_p10), %vm877_vm1, %v918_v60  ;;  %v923_v6 = vld [vmem:[#allocation2 + $0x48] sm:$0xff] (!%p1917_p10)  ;;  %v957_v7 = vld [vmem:[%s2921_s7 + $0x50] sm:$0xff] (!%p1917_p10) }
 0x1d9   : > { %v2039_v15 = vadd.f32 %v2038_v12, %v2037_v9  ;;  %v2087_v16 = vadd.f32 %v2086_v14, %v2085_v10  ;;  %v2040_v17 = vpop.f32.mrb[26].mxu0  ;;  %v2088_v18 = vpop.f32.mrb[26].mxu1  ;;  %v958_v9 = vld [vmem:[%s2921_s7 + $0x58] sm:$0xff] (!%p1917_p10) }
 0x1da   : > { %v2041_v20 = vpop.f32.mrb[27].mxu0  ;;  %v2089_v22 = vpop.f32.mrb[27].mxu1  ;;  %2172 = vmatmul.mubr.msk.f32.gmra.mrb[4].mxu1 (!%p1917_p10), %vm877_vm1, %v952_v61 }
 0x1db   : > { %v857_v23 = vadd.f32 %v2039_v15, %v424_v11  ;;  %v873_v24 = vadd.f32 %v2087_v16, %v440_v13  ;;  %v2042_v25 = vadd.f32 %v2041_v20, %v2040_v17  ;;  %v2090_v26 = vadd.f32 %v2089_v22, %v2088_v18  ;;  %2222 = vmatmul.mubr.msk.f32.gmra.mrb[4].mxu0 (!%p1917_p10), %vm877_vm1, %v919_v62  ;;  %v959_v11 = vld [vmem:[%s2921_s7 + $0x60] sm:$0xff] (!%p1917_p10)  ;;  %v960_v13 = vld [vmem:[%s2921_s7 + $0x68] sm:$0xff] (!%p1917_p10)  ;;  %v961_v15 = vld [vmem:[%s2921_s7 + $0x70] sm:$0xff] (!%p1917_p10) }
 0x1dc   : > { %2174 = vmatprep.mubr.msk.f32.mxu1 (!%p1917_p10), %vm877_vm1, %v953_v63  ;;  %2224 = vmatprep.mubr.msk.f32.mxu0 (!%p1917_p10), %vm877_vm1, %v920_v0  ;;  %v924_v8 = vld [vmem:[#allocation2 + $0x50] sm:$0xff] (!%p1917_p10)  ;;  %v962_v17 = vld [vmem:[%s2921_s7 + $0x78] sm:$0xff] (!%p1917_p10)  ;;  %v930_v20 = vld [vmem:[#allocation2 + $0x80] sm:$0xff] (!%p1917_p10) }
 0x1dd   : > { %890 = vst.msk [vmem:[#allocation2 + $0x60] sm:$0xff] %vm877_vm1, %v857_v23  ;;  %906 = vst.msk [vmem:[#allocation2 + $0xe0] sm:$0xff] %vm877_vm1, %v873_v24  ;;  %v858_v27 = vadd.f32 %v2042_v25, %v425_v19  ;;  %v874_v28 = vadd.f32 %v2090_v26, %v441_v21  ;;  %v963_v19 = vld [vmem:[%s2921_s7 + $0x80] sm:$0xff] (!%p1917_p10)  ;;  %v964_v21 = vld [vmem:[%s2921_s7 + $0x88] sm:$0xff] (!%p1917_p10) }
 0x1de   : > { %2175 = vmatmul.mubr.msk.f32.gmra.mrb[6].mxu1 (!%p1917_p10), %vm877_vm1, %v954_v1  ;;  %v925_v10 = vld [vmem:[#allocation2 + $0x58] sm:$0xff] (!%p1917_p10)  ;;  %v931_v22 = vld [vmem:[#allocation2 + $0x88] sm:$0xff] (!%p1917_p10)  ;;  %v965_v23 = vld [vmem:[%s2921_s7 + $0x90] sm:$0xff] (!%p1917_p10) }
 0x1df   : > { %891 = vst.msk [vmem:[#allocation2 + $0x68] sm:$0xff] %vm877_vm1, %v858_v27  ;;  %907 = vst.msk [vmem:[#allocation2 + $0xe8] sm:$0xff] %vm877_vm1, %v874_v28  ;;  %v2043_v29 = vpop.f32.mrb[28].mxu0  ;;  %v2091_v30 = vpop.f32.mrb[28].mxu1  ;;  %2225 = vmatmul.mubr.msk.f32.gmra.mrb[6].mxu0 (!%p1917_p10), %vm877_vm1, %v921_v2  ;;  %2177 = vmatprep.mubr.msk.f32.mxu1 (!%p1917_p10), %vm877_vm1, %v955_v3  ;;  %v932_v24 = vld [vmem:[#allocation2 + $0x90] sm:$0xff] (!%p1917_p10)  ;;  %v966_v25 = vld [vmem:[%s2921_s7 + $0x98] sm:$0xff] (!%p1917_p10) }
 0x1e0   : > { %v2044_v32 = vpop.f32.mrb[29].mxu0  ;;  %v2092_v34 = vpop.f32.mrb[29].mxu1  ;;  %2227 = vmatprep.mubr.msk.f32.mxu0 (!%p1917_p10), %vm877_vm1, %v922_v4  ;;  %v933_v26 = vld [vmem:[#allocation2 + $0x98] sm:$0xff] (!%p1917_p10)  ;;  %v967_v27 = vld [vmem:[%s2921_s7 + $0xa0] sm:$0xff] (!%p1917_p10) }
 0x1e1   : > { %v2045_v35 = vadd.f32 %v2044_v32, %v2043_v29  ;;  %v2093_v36 = vadd.f32 %v2092_v34, %v2091_v30  ;;  %v2046_v37 = vpop.f32.mrb[30].mxu0  ;;  %v2094_v38 = vpop.f32.mrb[30].mxu1  ;;  %913 = sbr.rel (%p1917_p10) target bundleno = 747 (0x2eb), region = 68  ;;  %v934_v28 = vld [vmem:[#allocation2 + $0xa0] sm:$0xff] (!%p1917_p10)  ;;  %v968_v29 = vld [vmem:[%s2921_s7 + $0xa8] sm:$0xff] (!%p1917_p10)  ;;  %v936_v32 = vld [vmem:[#allocation2 + $0xb0] sm:$0xff] (!%p1917_p10) }
 0x1e2   : > { %v2047_v40 = vpop.f32.mrb[31].mxu0  ;;  %v2095_v42 = vpop.f32.mrb[31].mxu1  ;;  %2178 = vmatmul.mubr.msk.f32.gmra.mrb[8].mxu1 (!%p1917_p10), %vm877_vm1, %v956_v5  ;;  %v935_v30 = vld [vmem:[#allocation2 + $0xa8] sm:$0xff] (!%p1917_p10)  ;;  %v937_v34 = vld [vmem:[#allocation2 + $0xb8] sm:$0xff] (!%p1917_p10) }
 0x1e3   : > { %v859_v43 = vadd.f32 %v2045_v35, %v426_v31  ;;  %v875_v44 = vadd.f32 %v2093_v36, %v442_v33  ;;  %v2048_v45 = vadd.f32 %v2047_v40, %v2046_v37  ;;  %v2096_v46 = vadd.f32 %v2095_v42, %v2094_v38  ;;  %2228 = vmatmul.mubr.msk.f32.gmra.mrb[8].mxu0 (!%p1917_p10), %vm877_vm1, %v923_v6  ;;  %v969_v31 = vld [vmem:[%s2921_s7 + $0xb0] sm:$0xff] (!%p1917_p10)  ;;  %v970_v33 = vld [vmem:[%s2921_s7 + $0xb8] sm:$0xff] (!%p1917_p10)  ;;  %v971_v35 = vld [vmem:[%s2921_s7 + $0xc0] sm:$0xff] (!%p1917_p10) }
 0x1e4   : > { %2180 = vmatprep.mubr.msk.f32.mxu1 (!%p1917_p10), %vm877_vm1, %v957_v7  ;;  %2230 = vmatprep.mubr.msk.f32.mxu0 (!%p1917_p10), %vm877_vm1, %v924_v8  ;;  %v926_v12 = vld [vmem:[#allocation2 + $0x60] sm:$0xff] (!%p1917_p10)  ;;  %v972_v37 = vld [vmem:[%s2921_s7 + $0xc8] sm:$0xff] (!%p1917_p10)  ;;  %v940_v40 = vld [vmem:[#allocation2 + $0xd0] sm:$0xff] (!%p1917_p10) }
 0x1e5   : > { %892 = vst.msk [vmem:[#allocation2 + $0x70] sm:$0xff] %vm877_vm1, %v859_v43  ;;  %908 = vst.msk [vmem:[#allocation2 + $0xf0] sm:$0xff] %vm877_vm1, %v875_v44  ;;  %v860_v47 = vadd.f32 %v2048_v45, %v427_v39  ;;  %v876_v48 = vadd.f32 %v2096_v46, %v443_v41  ;;  %v938_v36 = vld [vmem:[#allocation2 + $0xc0] sm:$0xff] (!%p1917_p10)  ;;  %v939_v38 = vld [vmem:[#allocation2 + $0xc8] sm:$0xff] (!%p1917_p10) }
 0x1e6   : > { %2181 = vmatmul.mubr.msk.f32.gmra.mrb[10].mxu1 (!%p1917_p10), %vm877_vm1, %v958_v9  ;;  %v927_v14 = vld [vmem:[#allocation2 + $0x68] sm:$0xff] (!%p1917_p10)  ;;  %v973_v39 = vld [vmem:[%s2921_s7 + $0xd0] sm:$0xff] (!%p1917_p10)  ;;  %v974_v41 = vld [vmem:[%s2921_s7 + $0xd8] sm:$0xff] (!%p1917_p10) }
 0x1e7   : > { %893 = vst.msk [vmem:[#allocation2 + $0x78] sm:$0xff] %vm877_vm1, %v860_v47  ;;  %909 = vst.msk [vmem:[#allocation2 + $0xf8] sm:$0xff] %vm877_vm1, %v876_v48  ;;  %2231 = vmatmul.mubr.msk.f32.gmra.mrb[10].mxu0 (!%p1917_p10), %vm877_vm1, %v925_v10  ;;  %2183 = vmatprep.mubr.msk.f32.mxu1 (!%p1917_p10), %vm877_vm1, %v959_v11  ;;  %v941_v42 = vld [vmem:[#allocation2 + $0xd8] sm:$0xff] (!%p1917_p10)  ;;  %v975_v43 = vld [vmem:[%s2921_s7 + $0xe0] sm:$0xff] (!%p1917_p10) }
 0x1e8   : > { %2233 = vmatprep.mubr.msk.f32.mxu0 %vm877_vm1, %v926_v12  ;;  %v942_v44 = vld [vmem:[#allocation2 + $0xe0] sm:$0xff]  ;;  %v976_v45 = vld [vmem:[%s2921_s7 + $0xe8] sm:$0xff]  ;;  %v977_v47 = vld [vmem:[%s2921_s7 + $0xf0] sm:$0xff] }
 0x1e9   : > { %v943_v46 = vld [vmem:[#allocation2 + $0xe8] sm:$0xff] }
 0x1ea   : > { %2184 = vmatmul.mubr.msk.f32.gmra.mrb[12].mxu1 %vm877_vm1, %v960_v13 }
 0x1eb   : > { %2234 = vmatmul.mubr.msk.f32.gmra.mrb[12].mxu0 %vm877_vm1, %v927_v14  ;;  %2186 = vmatprep.mubr.msk.f32.mxu1 %vm877_vm1, %v961_v15 }
 0x1ec   : > { %v928_v16 = vld [vmem:[#allocation2 + $0x70] sm:$0xff] }
 0x1ed   : > { %2236 = vmatprep.mubr.msk.f32.mxu0 %vm877_vm1, %v928_v16  ;;  %v944_v48 = vld [vmem:[#allocation2 + $0xf0] sm:$0xff] }
 0x1ee   : > { %v929_v18 = vld [vmem:[#allocation2 + $0x78] sm:$0xff]  ;;  %2187 = vmatmul.mubr.msk.f32.gmra.mrb[14].mxu1 %vm877_vm1, %v962_v17 }
 0x1ef   : > { %2237 = vmatmul.mubr.msk.f32.gmra.mrb[14].mxu0 %vm877_vm1, %v929_v18  ;;  %2189 = vmatprep.mubr.msk.f32.mxu1 %vm877_vm1, %v963_v19  ;;  %v945_v50 = vld [vmem:[#allocation2 + $0xf8] sm:$0xff] }
 0x1f0   : > { %2239 = vmatprep.mubr.msk.f32.mxu0 %vm877_vm1, %v930_v20 }
 0x1f2   : > { %2190 = vmatmul.mubr.msk.f32.gmra.mrb[16].mxu1 %vm877_vm1, %v964_v21 }
 0x1f3   : > { %2240 = vmatmul.mubr.msk.f32.gmra.mrb[16].mxu0 %vm877_vm1, %v931_v22  ;;  %2192 = vmatprep.mubr.msk.f32.mxu1 %vm877_vm1, %v965_v23 }
 0x1f4   : > { %2242 = vmatprep.mubr.msk.f32.mxu0 %vm877_vm1, %v932_v24 }
 0x1f6   : > { %2193 = vmatmul.mubr.msk.f32.gmra.mrb[18].mxu1 %vm877_vm1, %v966_v25 }
 0x1f7   : > { %2243 = vmatmul.mubr.msk.f32.gmra.mrb[18].mxu0 %vm877_vm1, %v933_v26  ;;  %2195 = vmatprep.mubr.msk.f32.mxu1 %vm877_vm1, %v967_v27 }
 0x1f8   : > { %2245 = vmatprep.mubr.msk.f32.mxu0 %vm877_vm1, %v934_v28 }
 0x1fa   : > { %2196 = vmatmul.mubr.msk.f32.gmra.mrb[20].mxu1 %vm877_vm1, %v968_v29 }
 0x1fb   : > { %2246 = vmatmul.mubr.msk.f32.gmra.mrb[20].mxu0 %vm877_vm1, %v935_v30  ;;  %2198 = vmatprep.mubr.msk.f32.mxu1 %vm877_vm1, %v969_v31 }
 0x1fc   : > { %2248 = vmatprep.mubr.msk.f32.mxu0 %vm877_vm1, %v936_v32 }
 0x1fe   : > { %2199 = vmatmul.mubr.msk.f32.gmra.mrb[22].mxu1 %vm877_vm1, %v970_v33 }
 0x1ff   : > { %2249 = vmatmul.mubr.msk.f32.gmra.mrb[22].mxu0 %vm877_vm1, %v937_v34  ;;  %2201 = vmatprep.mubr.msk.f32.mxu1 %vm877_vm1, %v971_v35 }
 0x200   : > { %2251 = vmatprep.mubr.msk.f32.mxu0 %vm877_vm1, %v938_v36 }
 0x202   : > { %2202 = vmatmul.mubr.msk.f32.gmra.mrb[24].mxu1 %vm877_vm1, %v972_v37 }
 0x203   : > { %2252 = vmatmul.mubr.msk.f32.gmra.mrb[24].mxu0 %vm877_vm1, %v939_v38  ;;  %2204 = vmatprep.mubr.msk.f32.mxu1 %vm877_vm1, %v973_v39 }
 0x204   : > { %2254 = vmatprep.mubr.msk.f32.mxu0 %vm877_vm1, %v940_v40 }
 0x206   : > { %2205 = vmatmul.mubr.msk.f32.gmra.mrb[26].mxu1 %vm877_vm1, %v974_v41 }
 0x207   : > { %2255 = vmatmul.mubr.msk.f32.gmra.mrb[26].mxu0 %vm877_vm1, %v941_v42  ;;  %2207 = vmatprep.mubr.msk.f32.mxu1 %vm877_vm1, %v975_v43 }
 0x208   : > { %2257 = vmatprep.mubr.msk.f32.mxu0 %vm877_vm1, %v942_v44 }
 0x20a   : > { %2208 = vmatmul.mubr.msk.f32.gmra.mrb[28].mxu1 %vm877_vm1, %v976_v45 }
 0x20b   : > { %2258 = vmatmul.mubr.msk.f32.gmra.mrb[28].mxu0 %vm877_vm1, %v943_v46  ;;  %2210 = vmatprep.mubr.msk.f32.mxu1 %vm877_vm1, %v977_v47 }
 0x20c   : > { %2260 = vmatprep.mubr.msk.f32.mxu0 %vm877_vm1, %v944_v48 }
 0x20e   : > { %2211 = vmatmul.mubr.msk.f32.gmra.mrb[30].mxu1 %vm877_vm1, %v978_v49 }
 0x20f   : > { %2261 = vmatmul.mubr.msk.f32.gmra.mrb[30].mxu0 %vm877_vm1, %v945_v50 }
 0x2a5   : > { %v2167_v51 = vpop.f32.mrb[0].mxu1 }
 0x2a6   : > { %v2217_v52 = vpop.f32.mrb[0].mxu0  ;;  %v1142_v55 = vpop.f32.mrb[1].mxu1 }
 0x2a7   : > { %v1469_v54 = vadd.f32 %v2217_v52, %v2167_v51  ;;  %v1463_v56 = vpop.f32.mrb[1].mxu0 }
 0x2a8   : > { %v1464_v57 = vadd.f32 %v1463_v56, %v1142_v55 }
 0x2a9   : > { %v1630_v58 = vadd.f32 %v3154_v53, %v1469_v54  ;;  %v2170_v60 = vpop.f32.mrb[2].mxu1 }
 0x2aa   : > { %v1629_v59 = vadd.f32 %v3154_v53, %v1464_v57  ;;  %v2220_v61 = vpop.f32.mrb[2].mxu0  ;;  %v1152_v0 = vpop.f32.mrb[3].mxu1 }
 0x2ab   : > { %v1662_v62 = vmax.f32 %v1630_v58, 0.0  ;;  %v1479_v63 = vadd.f32 %v2220_v61, %v2170_v60  ;;  %v1473_v1 = vpop.f32.mrb[3].mxu0 }
 0x2ac   : > { %v1661_v2 = vmax.f32 %v1629_v59, 0.0  ;;  %v1474_v3 = vadd.f32 %v1473_v1, %v1152_v0 }
 0x2ad   : > { %1695 = vst.msk [vmem:[%s2926_s25 + $0x8] sm:$0xff] %vm1693_vm2, %v1662_v62  ;;  %v1632_v4 = vadd.f32 %v3154_v53, %v1479_v63  ;;  %v2173_v6 = vpop.f32.mrb[4].mxu1 }
 0x2ae   : > { %1694 = vst.msk [vmem:[%s2926_s25] sm:$0xff] %vm1693_vm2, %v1661_v2  ;;  %v1631_v5 = vadd.f32 %v3154_v53, %v1474_v3  ;;  %v2223_v7 = vpop.f32.mrb[4].mxu0  ;;  %v1162_v10 = vpop.f32.mrb[5].mxu1 }
 0x2af   : > { %v1664_v8 = vmax.f32 %v1632_v4, 0.0  ;;  %v1489_v9 = vadd.f32 %v2223_v7, %v2173_v6  ;;  %v1483_v11 = vpop.f32.mrb[5].mxu0 }
 0x2b0   : > { %v1663_v12 = vmax.f32 %v1631_v5, 0.0  ;;  %v1484_v13 = vadd.f32 %v1483_v11, %v1162_v10 }
 0x2b1   : > { %1697 = vst.msk [vmem:[%s2926_s25 + $0x18] sm:$0xff] %vm1693_vm2, %v1664_v8  ;;  %v1634_v14 = vadd.f32 %v3154_v53, %v1489_v9  ;;  %v2176_v16 = vpop.f32.mrb[6].mxu1 }
 0x2b2   : > { %1696 = vst.msk [vmem:[%s2926_s25 + $0x10] sm:$0xff] %vm1693_vm2, %v1663_v12  ;;  %v1633_v15 = vadd.f32 %v3154_v53, %v1484_v13  ;;  %v2226_v17 = vpop.f32.mrb[6].mxu0  ;;  %v1172_v20 = vpop.f32.mrb[7].mxu1 }
 0x2b3   : > { %v1666_v18 = vmax.f32 %v1634_v14, 0.0  ;;  %v1499_v19 = vadd.f32 %v2226_v17, %v2176_v16  ;;  %v1493_v21 = vpop.f32.mrb[7].mxu0 }
 0x2b4   : > { %v1665_v22 = vmax.f32 %v1633_v15, 0.0  ;;  %v1494_v23 = vadd.f32 %v1493_v21, %v1172_v20 }
 0x2b5   : > { %1699 = vst.msk [vmem:[%s2926_s25 + $0x28] sm:$0xff] %vm1693_vm2, %v1666_v18  ;;  %v1636_v24 = vadd.f32 %v3154_v53, %v1499_v19  ;;  %v2179_v26 = vpop.f32.mrb[8].mxu1 }
 0x2b6   : > { %1698 = vst.msk [vmem:[%s2926_s25 + $0x20] sm:$0xff] %vm1693_vm2, %v1665_v22  ;;  %v1635_v25 = vadd.f32 %v3154_v53, %v1494_v23  ;;  %v2229_v27 = vpop.f32.mrb[8].mxu0  ;;  %v1182_v30 = vpop.f32.mrb[9].mxu1 }
 0x2b7   : > { %v1668_v28 = vmax.f32 %v1636_v24, 0.0  ;;  %v1509_v29 = vadd.f32 %v2229_v27, %v2179_v26  ;;  %v1503_v31 = vpop.f32.mrb[9].mxu0 }
 0x2b8   : > { %v1667_v32 = vmax.f32 %v1635_v25, 0.0  ;;  %v1504_v33 = vadd.f32 %v1503_v31, %v1182_v30 }
 0x2b9   : > { %1701 = vst.msk [vmem:[%s2926_s25 + $0x38] sm:$0xff] %vm1693_vm2, %v1668_v28  ;;  %v1638_v34 = vadd.f32 %v3154_v53, %v1509_v29  ;;  %v2182_v36 = vpop.f32.mrb[10].mxu1 }
 0x2ba   : > { %1700 = vst.msk [vmem:[%s2926_s25 + $0x30] sm:$0xff] %vm1693_vm2, %v1667_v32  ;;  %v1637_v35 = vadd.f32 %v3154_v53, %v1504_v33  ;;  %v2232_v37 = vpop.f32.mrb[10].mxu0  ;;  %v1192_v40 = vpop.f32.mrb[11].mxu1 }
 0x2bb   : > { %v1670_v38 = vmax.f32 %v1638_v34, 0.0  ;;  %v1519_v39 = vadd.f32 %v2232_v37, %v2182_v36  ;;  %v1513_v41 = vpop.f32.mrb[11].mxu0 }
 0x2bc   : > { %v1669_v42 = vmax.f32 %v1637_v35, 0.0  ;;  %v1514_v43 = vadd.f32 %v1513_v41, %v1192_v40 }
 0x2bd   : > { %1703 = vst.msk [vmem:[%s2926_s25 + $0x48] sm:$0xff] %vm1693_vm2, %v1670_v38  ;;  %v1640_v44 = vadd.f32 %v3154_v53, %v1519_v39  ;;  %v2185_v46 = vpop.f32.mrb[12].mxu1 }
 0x2be   : > { %1702 = vst.msk [vmem:[%s2926_s25 + $0x40] sm:$0xff] %vm1693_vm2, %v1669_v42  ;;  %v1639_v45 = vadd.f32 %v3154_v53, %v1514_v43  ;;  %v2235_v47 = vpop.f32.mrb[12].mxu0  ;;  %v1202_v50 = vpop.f32.mrb[13].mxu1 }
 0x2bf   : > { %v1672_v48 = vmax.f32 %v1640_v44, 0.0  ;;  %v1529_v49 = vadd.f32 %v2235_v47, %v2185_v46  ;;  %v1523_v51 = vpop.f32.mrb[13].mxu0 }
 0x2c0   : > { %v1671_v52 = vmax.f32 %v1639_v45, 0.0  ;;  %v1524_v54 = vadd.f32 %v1523_v51, %v1202_v50 }
 0x2c1   : > { %1705 = vst.msk [vmem:[%s2926_s25 + $0x58] sm:$0xff] %vm1693_vm2, %v1672_v48  ;;  %v1642_v55 = vadd.f32 %v3154_v53, %v1529_v49  ;;  %v2188_v57 = vpop.f32.mrb[14].mxu1 }
 0x2c2   : > { %1704 = vst.msk [vmem:[%s2926_s25 + $0x50] sm:$0xff] %vm1693_vm2, %v1671_v52  ;;  %v1641_v56 = vadd.f32 %v3154_v53, %v1524_v54  ;;  %v2238_v58 = vpop.f32.mrb[14].mxu0  ;;  %v1212_v61 = vpop.f32.mrb[15].mxu1 }
 0x2c3   : > { %v1674_v59 = vmax.f32 %v1642_v55, 0.0  ;;  %v1539_v60 = vadd.f32 %v2238_v58, %v2188_v57  ;;  %v1533_v62 = vpop.f32.mrb[15].mxu0 }
 0x2c4   : > { %v1673_v63 = vmax.f32 %v1641_v56, 0.0  ;;  %v1534_v0 = vadd.f32 %v1533_v62, %v1212_v61 }
 0x2c5   : > { %1707 = vst.msk [vmem:[%s2926_s25 + $0x68] sm:$0xff] %vm1693_vm2, %v1674_v59  ;;  %v1644_v1 = vadd.f32 %v3154_v53, %v1539_v60  ;;  %v2191_v3 = vpop.f32.mrb[16].mxu1 }
 0x2c6   : > { %1706 = vst.msk [vmem:[%s2926_s25 + $0x60] sm:$0xff] %vm1693_vm2, %v1673_v63  ;;  %v1643_v2 = vadd.f32 %v3154_v53, %v1534_v0  ;;  %v2241_v4 = vpop.f32.mrb[16].mxu0  ;;  %v1222_v7 = vpop.f32.mrb[17].mxu1 }
 0x2c7   : > { %v1676_v5 = vmax.f32 %v1644_v1, 0.0  ;;  %v1549_v6 = vadd.f32 %v2241_v4, %v2191_v3  ;;  %v1543_v8 = vpop.f32.mrb[17].mxu0 }
 0x2c8   : > { %v1675_v9 = vmax.f32 %v1643_v2, 0.0  ;;  %v1544_v10 = vadd.f32 %v1543_v8, %v1222_v7 }
 0x2c9   : > { %1709 = vst.msk [vmem:[%s2926_s25 + $0x78] sm:$0xff] %vm1693_vm2, %v1676_v5  ;;  %v1646_v11 = vadd.f32 %v3154_v53, %v1549_v6  ;;  %v2194_v13 = vpop.f32.mrb[18].mxu1 }
 0x2ca   : > { %1708 = vst.msk [vmem:[%s2926_s25 + $0x70] sm:$0xff] %vm1693_vm2, %v1675_v9  ;;  %v1645_v12 = vadd.f32 %v3154_v53, %v1544_v10  ;;  %v2244_v14 = vpop.f32.mrb[18].mxu0  ;;  %v1232_v17 = vpop.f32.mrb[19].mxu1 }
 0x2cb   : > { %v1678_v15 = vmax.f32 %v1646_v11, 0.0  ;;  %v1559_v16 = vadd.f32 %v2244_v14, %v2194_v13  ;;  %v1553_v18 = vpop.f32.mrb[19].mxu0 }
 0x2cc   : > { %v1677_v19 = vmax.f32 %v1645_v12, 0.0  ;;  %v1554_v20 = vadd.f32 %v1553_v18, %v1232_v17 }
 0x2cd   : > { %1711 = vst.msk [vmem:[%s2926_s25 + $0x88] sm:$0xff] %vm1693_vm2, %v1678_v15  ;;  %v1648_v21 = vadd.f32 %v3154_v53, %v1559_v16  ;;  %v2197_v23 = vpop.f32.mrb[20].mxu1 }
 0x2ce   : > { %1710 = vst.msk [vmem:[%s2926_s25 + $0x80] sm:$0xff] %vm1693_vm2, %v1677_v19  ;;  %v1647_v22 = vadd.f32 %v3154_v53, %v1554_v20  ;;  %v2247_v24 = vpop.f32.mrb[20].mxu0  ;;  %v1242_v27 = vpop.f32.mrb[21].mxu1 }
 0x2cf   : > { %v1680_v25 = vmax.f32 %v1648_v21, 0.0  ;;  %v1569_v26 = vadd.f32 %v2247_v24, %v2197_v23  ;;  %v1563_v28 = vpop.f32.mrb[21].mxu0 }
 0x2d0   : > { %v1679_v29 = vmax.f32 %v1647_v22, 0.0  ;;  %v1564_v30 = vadd.f32 %v1563_v28, %v1242_v27 }
 0x2d1   : > { %1713 = vst.msk [vmem:[%s2926_s25 + $0x98] sm:$0xff] %vm1693_vm2, %v1680_v25  ;;  %v1650_v31 = vadd.f32 %v3154_v53, %v1569_v26  ;;  %v2200_v33 = vpop.f32.mrb[22].mxu1 }
 0x2d2   : > { %1712 = vst.msk [vmem:[%s2926_s25 + $0x90] sm:$0xff] %vm1693_vm2, %v1679_v29  ;;  %v1649_v32 = vadd.f32 %v3154_v53, %v1564_v30  ;;  %v2250_v34 = vpop.f32.mrb[22].mxu0  ;;  %v1252_v37 = vpop.f32.mrb[23].mxu1 }
 0x2d3   : > { %v1682_v35 = vmax.f32 %v1650_v31, 0.0  ;;  %v1579_v36 = vadd.f32 %v2250_v34, %v2200_v33  ;;  %v1573_v38 = vpop.f32.mrb[23].mxu0 }
 0x2d4   : > { %v1681_v39 = vmax.f32 %v1649_v32, 0.0  ;;  %v1574_v40 = vadd.f32 %v1573_v38, %v1252_v37 }
 0x2d5   : > { %1715 = vst.msk [vmem:[%s2926_s25 + $0xa8] sm:$0xff] %vm1693_vm2, %v1682_v35  ;;  %v1652_v41 = vadd.f32 %v3154_v53, %v1579_v36  ;;  %v2203_v43 = vpop.f32.mrb[24].mxu1 }
 0x2d6   : > { %1714 = vst.msk [vmem:[%s2926_s25 + $0xa0] sm:$0xff] %vm1693_vm2, %v1681_v39  ;;  %v1651_v42 = vadd.f32 %v3154_v53, %v1574_v40  ;;  %v2253_v44 = vpop.f32.mrb[24].mxu0  ;;  %v1262_v47 = vpop.f32.mrb[25].mxu1 }
 0x2d7   : > { %v1684_v45 = vmax.f32 %v1652_v41, 0.0  ;;  %v1589_v46 = vadd.f32 %v2253_v44, %v2203_v43  ;;  %v1583_v48 = vpop.f32.mrb[25].mxu0 }
 0x2d8   : > { %v1683_v49 = vmax.f32 %v1651_v42, 0.0  ;;  %v1584_v50 = vadd.f32 %v1583_v48, %v1262_v47 }
 0x2d9   : > { %1717 = vst.msk [vmem:[%s2926_s25 + $0xb8] sm:$0xff] %vm1693_vm2, %v1684_v45  ;;  %v1654_v51 = vadd.f32 %v3154_v53, %v1589_v46  ;;  %v2206_v54 = vpop.f32.mrb[26].mxu1 }
 0x2da   : > { %1716 = vst.msk [vmem:[%s2926_s25 + $0xb0] sm:$0xff] %vm1693_vm2, %v1683_v49  ;;  %v1653_v52 = vadd.f32 %v3154_v53, %v1584_v50  ;;  %v2256_v55 = vpop.f32.mrb[26].mxu0  ;;  %v1272_v58 = vpop.f32.mrb[27].mxu1 }
 0x2db   : > { %v1686_v56 = vmax.f32 %v1654_v51, 0.0  ;;  %v1599_v57 = vadd.f32 %v2256_v55, %v2206_v54  ;;  %v1593_v59 = vpop.f32.mrb[27].mxu0 }
 0x2dc   : > { %v1685_v60 = vmax.f32 %v1653_v52, 0.0  ;;  %v1594_v61 = vadd.f32 %v1593_v59, %v1272_v58 }
 0x2dd   : > { %1719 = vst.msk [vmem:[%s2926_s25 + $0xc8] sm:$0xff] %vm1693_vm2, %v1686_v56  ;;  %v1656_v62 = vadd.f32 %v3154_v53, %v1599_v57  ;;  %v2209_v0 = vpop.f32.mrb[28].mxu1 }
 0x2de   : > { %1718 = vst.msk [vmem:[%s2926_s25 + $0xc0] sm:$0xff] %vm1693_vm2, %v1685_v60  ;;  %v1655_v63 = vadd.f32 %v3154_v53, %v1594_v61  ;;  %v2259_v1 = vpop.f32.mrb[28].mxu0  ;;  %v1282_v4 = vpop.f32.mrb[29].mxu1 }
 0x2df   : > { %v1688_v2 = vmax.f32 %v1656_v62, 0.0  ;;  %v1609_v3 = vadd.f32 %v2259_v1, %v2209_v0  ;;  %v1603_v5 = vpop.f32.mrb[29].mxu0 }
 0x2e0   : > { %v1687_v6 = vmax.f32 %v1655_v63, 0.0  ;;  %v1604_v7 = vadd.f32 %v1603_v5, %v1282_v4 }
 0x2e1   : > { %1721 = vst.msk [vmem:[%s2926_s25 + $0xd8] sm:$0xff] %vm1693_vm2, %v1688_v2  ;;  %v1658_v8 = vadd.f32 %v3154_v53, %v1609_v3  ;;  %v2212_v10 = vpop.f32.mrb[30].mxu1 }
 0x2e2   : > { %1720 = vst.msk [vmem:[%s2926_s25 + $0xd0] sm:$0xff] %vm1693_vm2, %v1687_v6  ;;  %v1657_v9 = vadd.f32 %v3154_v53, %v1604_v7  ;;  %v2262_v11 = vpop.f32.mrb[30].mxu0  ;;  %v1292_v14 = vpop.f32.mrb[31].mxu1 }
 0x2e3   : > { %v1690_v12 = vmax.f32 %v1658_v8, 0.0  ;;  %v1619_v13 = vadd.f32 %v2262_v11, %v2212_v10  ;;  %v1613_v15 = vpop.f32.mrb[31].mxu0 }
 0x2e4   : > { %v1689_v16 = vmax.f32 %v1657_v9, 0.0  ;;  %v1614_v17 = vadd.f32 %v1613_v15, %v1292_v14 }
 0x2e5   : > { %1723 = vst.msk [vmem:[%s2926_s25 + $0xe8] sm:$0xff] %vm1693_vm2, %v1690_v12  ;;  %v1660_v18 = vadd.f32 %v3154_v53, %v1619_v13 }
 0x2e6   : > { %1722 = vst.msk [vmem:[%s2926_s25 + $0xe0] sm:$0xff] %vm1693_vm2, %v1689_v16  ;;  %v1659_v19 = vadd.f32 %v3154_v53, %v1614_v17 }
 0x2e7   : > { %v1692_v20 = vmax.f32 %v1660_v18, 0.0 }
 0x2e8   : > { %v1691_v21 = vmax.f32 %v1659_v19, 0.0 }
 0x2e9   : > { %1725 = vst.msk [vmem:[%s2926_s25 + $0xf8] sm:$0xff] %vm1693_vm2, %v1692_v20 }
 0x2ea   : > { %1724 = vst.msk [vmem:[%s2926_s25 + $0xf0] sm:$0xff] %vm1693_vm2, %v1691_v21 }
 0x2eb PF: > { %s3307_s24 = sld [smem:[#allocation13_spill]]  ;;  %s3308_s21 = smov %s2630_s22 }
 0x2ec   : > { %s3309_s22 = smov %s2634_s23  ;;  %s3310_s23 = smov %s2864_s14 }
 0x2ed   : > { %s3312_s25 = smov %s2650_s27  ;;  %s3314_s27 = smov %s3321_s28 }
 0x2f1   : > { %s21_s3 = sadd.s32 1, %s3307_s24   ;;  %s3311_s24 = smov %s2646_s26 }
 0x2f2   : > { %p18_p0 = scmp.ge.s32.totalorder %s21_s3, 11   ;;  %s3313_s26 = smov %s3317_s10 }
 0x2f3   : > { %s3315_s28 = smov %s21_s3 }
 0x2f4   :  { %20 = sbr.rel (!%p18_p0) target bundleno = 11 (0xb), region = 110 }
 0x2fb   :  { %1748 = vsyncpa [#allocation4], 1 }
 0x2fc   :  { %1750 = vsyncpa [#allocation4 + $0x1], 1 }
 0x2fd   :  { %1751 = vsyncpa [#allocation6], 1 }
 0x2fe   :  { %1752 = vsyncpa [#allocation9], 1 }

</bundles_post_ra>
